<compile_context>
chip_gen: v6e
topology: v6e:2x2x1
jax: 0.10.0
libtpu: 0.0.40
codegen_flags: <defaults>
</compile_context>

<pallas_src>
import math

import numpy as np
import jax
import jax.numpy as jnp
from jax.experimental import pallas as pl
from jax.experimental.pallas import tpu as pltpu


# ---------------------------------------------------------------------------
# Kernel: one lower-triangular (l-tile, m-tile) pair per grid step
# ---------------------------------------------------------------------------
def _s4d_toeplitz_matmul_kernel(li_ref, mi_ref, tb_ref, u_ref, y_ref, acc_ref):
    # li_ref, mi_ref : SMEM (n_pairs,) i32  prefetched l-tile / m-tile indices
    # tb_ref         : VMEM (nl, TL, TL) bf16 per-diagonal-offset Toeplitz blocks
    #                  (constant index_map -> fetched once, resident in VMEM)
    # u_ref          : VMEM (B, TL, TH) bf16 input m-tile (all batches)
    # y_ref          : VMEM (B, TL, TH) f32  output l-tile (all batches)
    # acc_ref        : VMEM (B, TL, TH) f32  accumulator, persists across grid steps
    t = pl.program_id(1)          # pair index (inner, "arbitrary" axis)
    i = li_ref[t]                 # output (l) tile index
    m = mi_ref[t]                 # contraction (m) tile index; m <= i by construction

    @pl.when(m == 0)              # first pair of this l-tile's run
    def _init():
        acc_ref[...] = jnp.zeros_like(acc_ref)

    # Toeplitz block for lag offset (i - m); zeros above the main diagonal (and the
    # D*u skip on it) are already baked into the table -> no masks, no transcendentals.
    t_blk = tb_ref[i - m]                                   # (TL, TL) bf16

    nb = u_ref.shape[0]
    for b in range(nb):                                     # static unroll over batch
        acc_ref[b, :, :] = acc_ref[b, :, :] + jnp.dot(
            t_blk, u_ref[b, :, :], preferred_element_type=jnp.float32)

    @pl.when(m == i)              # last pair of this l-tile's run -> emit the tile
    def _store():
        y_ref[...] = acc_ref[...]


# ---------------------------------------------------------------------------
# Wrapper: O(N*L + L*TL) parameter preprocessing + one pallas_call
# ---------------------------------------------------------------------------
def s4d_layer_forward(u, params):
    """S4dLayer.forward: u (B, L, H) float32 -> (B, L, H) float32."""
    B, L, H = u.shape

    # lane-dense padding of L and H (sliced off at the end)
    Lp = ((L + 127) // 128) * 128
    Hp = ((H + 127) // 128) * 128
    TL = 256 if Lp % 256 == 0 else 128          # 256 fills v6e/v7x MXU; 128 is v5e-native
    nl = Lp // TL

    # H tile: keeps VMEM bounded on v7x (64 MiB) and gives megacore a parallel axis
    if Hp <= 512:
        TH = Hp
    elif Hp % 512 == 0:
        TH = 512
    elif Hp % 256 == 0:
        TH = 256
    else:
        TH = 128
    nh = Hp // TH

    # --- S4DKernel: cached k row (tiny O(N*Lp) complex math, plain JAX) -------------
    dt = jnp.exp(params["log_step"])[0]                              # scalar (H=1 kernel)
    A = jnp.minimum(params["A_re"], -1e-4) + 1j * params["A_im"]     # (N,)
    Cc = params["C"][:, 0] + 1j * params["C"][:, 1]                  # (N,)
    dtA = A * dt                                                     # (N,)
    Cmod = Cc * (jnp.exp(dtA) - 1.0) / A                             # (N,)
    lags = jnp.arange(Lp, dtype=jnp.float32)
    k = jnp.sum(jnp.real(Cmod[:, None] * jnp.exp(dtA[:, None] * lags[None, :])), axis=0)
    k = k.at[0].add(params["D"].reshape(()))        # fold the D*u skip into lag 0

    # --- per-diagonal-offset Toeplitz blocks: tb[d, a, b] = k[d*TL + a - b] ----------
    # Only nl distinct blocks exist (one per tile-diagonal offset); O(Lp*TL) elements.
    d_idx = jnp.arange(nl, dtype=jnp.int32)[:, None, None]
    a_idx = jnp.arange(TL, dtype=jnp.int32)[None, :, None]
    b_idx = jnp.arange(TL, dtype=jnp.int32)[None, None, :]
    lag = d_idx * TL + a_idx - b_idx                                 # (nl, TL, TL)
    tb = jnp.where(lag >= 0, k[jnp.clip(lag, 0, Lp - 1)], 0.0).astype(jnp.bfloat16)

    # --- activations: bf16 at the call boundary, zero-padded to (B, Lp, Hp) ----------
    uf = u.astype(jnp.bfloat16)
    if (Lp, Hp) != (L, H):
        uf = jnp.pad(uf, ((0, 0), (0, Lp - L), (0, Hp - H)))

    # --- lower-triangular (l-tile, m-tile) pair list, ordered by l-tile runs ---------
    li = np.concatenate([np.full(i + 1, i, dtype=np.int32) for i in range(nl)])
    mi = np.concatenate([np.arange(i + 1, dtype=np.int32) for i in range(nl)])
    n_pairs = int(li.shape[0])                    # nl*(nl+1)//2
    li = jnp.asarray(li)
    mi = jnp.asarray(mi)

    y_pad = pl.pallas_call(
        _s4d_toeplitz_matmul_kernel,
        out_shape=jax.ShapeDtypeStruct((B, Lp, Hp), jnp.float32),
        grid_spec=pltpu.PrefetchScalarGridSpec(
            num_scalar_prefetch=2,
            grid=(nh, n_pairs),                   # (H tile: parallel, pair: arbitrary)
            in_specs=[
                # whole Toeplitz table, constant block index -> one DMA, VMEM-resident
                pl.BlockSpec((nl, TL, TL), lambda h, t, li_r, mi_r: (0, 0, 0)),
                # u m-tile for the current pair (all batches in one block)
                pl.BlockSpec((B, TL, TH), lambda h, t, li_r, mi_r: (0, mi_r[t], h)),
            ],
            out_specs=pl.BlockSpec((B, TL, TH), lambda h, t, li_r, mi_r: (0, li_r[t], h)),
            scratch_shapes=[pltpu.VMEM((B, TL, TH), jnp.float32)],
        ),
        compiler_params=pltpu.CompilerParams(
            dimension_semantics=("parallel", "arbitrary"),
        ),
    )(li, mi, tb, uf)

    return y_pad[:, :L, :H]


# ---------------------------------------------------------------------------
# Pure-JAX reference (mirrors the PyTorch module's FFT path) for validation
# ---------------------------------------------------------------------------
def reference_forward(u, params):
    B, L, H = u.shape
    dt = jnp.exp(params["log_step"])                          # (1,)
    A = jnp.minimum(params["A_re"], -1e-4) + 1j * params["A_im"]
    C = (params["C"][:, 0] + 1j * params["C"][:, 1])[None, :]
    dtA = A * dt[:, None]                                     # (1, N)
    C = C * (jnp.exp(dtA) - 1.0) / A
    Kexp = dtA[..., None] * jnp.arange(L)                     # (1, N, L)
    k = jnp.real(jnp.einsum("hn,hnl->hl", C, jnp.exp(Kexp)))  # (1, L)

    ut = jnp.transpose(u, (0, 2, 1))                          # (B, H, L)
    k_f = jnp.fft.rfft(k, n=2 * L)
    u_f = jnp.fft.rfft(ut, n=2 * L)
    y = jnp.fft.irfft(u_f * k_f, n=2 * L)[..., :L]
    y = y + ut * params["D"]
    return jnp.transpose(y, (0, 2, 1))


if __name__ == "__main__":
    key = jax.random.PRNGKey(0)
    k1, k2, k3, k4 = jax.random.split(key, 4)

    # Parameters consistent with S4dLayer.__init__ / S4DKernel.__init__ (N = num_ssm)
    N = 64
    dt_min, dt_max = 0.01, 1.0
    log_step = (
        jax.random.uniform(k1, (1,)) * (math.log(dt_max) - math.log(dt_min))
        + math.log(dt_min)
    )
    C = jax.random.normal(k2, (N, 2)) * (0.5 ** 0.5)
    A_re = -0.5 * jnp.ones((N,), dtype=jnp.float32)
    A_im = math.pi * jnp.arange(N, dtype=jnp.float32)
    D = jax.random.normal(k3, (1,))
    params = dict(log_step=log_step, C=C, A_re=A_re, A_im=A_im, D=D)

    fwd = jax.jit(s4d_layer_forward)

    # Two small configs: one 256-aligned (TL=256 path, 3 triangular pairs) and one
    # that exercises L/H zero-padding and the 128-tile fallback (6 pairs).
    for (Bt, Lt, Ht) in ((2, 512, 128), (2, 384, 96)):
        u = jax.random.normal(jax.random.fold_in(k4, Lt), (Bt, Lt, Ht), dtype=jnp.float32)
        y = jax.block_until_ready(fwd(u, params))
        y_ref = reference_forward(u, params)
        err = float(jnp.max(jnp.abs(y - y_ref)))
        scale = max(1.0, float(jnp.max(jnp.abs(y_ref))))
        # bf16 Toeplitz + bf16 u operands with f32 accumulation -> 2% normalized budget
        assert err <= 2e-2 * scale, f"(B,L,H)={(Bt, Lt, Ht)}: max abs err {err} (scale {scale})"

    print("KERNEL_OK")
</pallas_src>

<mosaic_0001>
module attributes {stable_mosaic.version = 11 : i64} {
  func.func @_s4d_toeplitz_matmul_kernel(%arg0: i32, %arg1: i32, %arg2: memref<3xi32, #tpu.memory_space<smem>>, %arg3: memref<3xi32, #tpu.memory_space<smem>>, %arg4: memref<2x256x256xbf16, #tpu.memory_space<vmem>>, %arg5: memref<2x256x128xbf16, #tpu.memory_space<vmem>>, %arg6: memref<2x256x128xf32, #tpu.memory_space<vmem>>, %arg7: memref<2x256x128xf32, #tpu.memory_space<vmem>>) attributes {dimension_semantics = [#tpu.dimension_semantics<parallel>, #tpu.dimension_semantics<arbitrary>], iteration_bounds = array<i64: 1, 3>, scalar_prefetch = 2 : i64, scratch_operands = 1 : i64, tpu.core_type = #tpu.core_type<tc>, window_params = [{pipeline_mode = #tpu.pipeline_mode<synchronous>, transform_indices = @transform_0, window_bounds = array<i64: 2, 256, 256>}, {transform_indices = @transform_1, window_bounds = array<i64: 2, 256, 128>}, {transform_indices = @transform_2, window_bounds = array<i64: 2, 256, 128>}]} {
    %0 = arith.index_cast %arg1 : i32 to index
    %1 = memref.load %arg2[%0] : memref<3xi32, #tpu.memory_space<smem>>
    %2 = arith.index_cast %arg1 : i32 to index
    %3 = memref.load %arg3[%2] : memref<3xi32, #tpu.memory_space<smem>>
    %c0_i32 = arith.constant 0 : i32
    %4 = arith.cmpi eq, %3, %c0_i32 : i32
    %5 = arith.extui %4 : i1 to i32
    %c0_i32_0 = arith.constant 0 : i32
    %6 = arith.cmpi ne, %5, %c0_i32_0 : i32
    scf.if %6 {
      %cst_21 = arith.constant 0.000000e+00 : f32
      %32 = vector.broadcast %cst_21 : f32 to vector<2x256x128xf32>
      %c0_22 = arith.constant 0 : index
      %c0_23 = arith.constant 0 : index
      %c0_24 = arith.constant 0 : index
      %33 = vector.load %arg7[%c0_22, %c0_23, %c0_24] : memref<2x256x128xf32, #tpu.memory_space<vmem>>, vector<2x256x128xf32>
      tpu.vector_store %arg7[%c0_22, %c0_23, %c0_24], %32 {strides = array<i32>} : memref<2x256x128xf32, #tpu.memory_space<vmem>>, vector<2x256x128xf32>,
    } else {
    }
    %7 = arith.subi %1, %3 : i32
    %8 = arith.index_cast %7 : i32 to index
    %c0 = arith.constant 0 : index
    %c0_1 = arith.constant 0 : index
    %9 = vector.load %arg4[%8, %c0, %c0_1] : memref<2x256x256xbf16, #tpu.memory_space<vmem>>, vector<1x256x256xbf16>
    %10 = vector.shape_cast %9 : vector<1x256x256xbf16> to vector<256x256xbf16>
    %c0_2 = arith.constant 0 : index
    %c0_3 = arith.constant 0 : index
    %c0_4 = arith.constant 0 : index
    %11 = vector.load %arg7[%c0_2, %c0_3, %c0_4] : memref<2x256x128xf32, #tpu.memory_space<vmem>>, vector<1x256x128xf32>
    %12 = vector.shape_cast %11 : vector<1x256x128xf32> to vector<256x128xf32>
    %c0_5 = arith.constant 0 : index
    %c0_6 = arith.constant 0 : index
    %c0_7 = arith.constant 0 : index
    %13 = vector.load %arg5[%c0_5, %c0_6, %c0_7] : memref<2x256x128xbf16, #tpu.memory_space<vmem>>, vector<1x256x128xbf16>
    %14 = vector.shape_cast %13 : vector<1x256x128xbf16> to vector<256x128xbf16>
    %cst = arith.constant dense<0.000000e+00> : vector<256x128xf32>
    %15 = tpu.matmul %10, %14, %cst {dimension_numbers = #tpu.dot_dimension_numbers<[1], [0], [0], [1], [0, 0, 1, 1], [], []>} : vector<256x256xbf16>, vector<256x128xbf16>, vector<256x128xf32> -> vector<256x128xf32>
    %16 = arith.addf %12, %15 : vector<256x128xf32>
    %c0_8 = arith.constant 0 : index
    %c0_9 = arith.constant 0 : index
    %c0_10 = arith.constant 0 : index
    %17 = vector.load %arg7[%c0_8, %c0_9, %c0_10] : memref<2x256x128xf32, #tpu.memory_space<vmem>>, vector<1x256x128xf32>
    %18 = vector.shape_cast %17 : vector<1x256x128xf32> to vector<256x128xf32>
    %19 = vector.shape_cast %16 : vector<256x128xf32> to vector<1x256x128xf32>
    tpu.vector_store %arg7[%c0_8, %c0_9, %c0_10], %19 {strides = array<i32>} : memref<2x256x128xf32, #tpu.memory_space<vmem>>, vector<1x256x128xf32>,
    %c1 = arith.constant 1 : index
    %c0_11 = arith.constant 0 : index
    %c0_12 = arith.constant 0 : index
    %20 = vector.load %arg7[%c1, %c0_11, %c0_12] : memref<2x256x128xf32, #tpu.memory_space<vmem>>, vector<1x256x128xf32>
    %21 = vector.shape_cast %20 : vector<1x256x128xf32> to vector<256x128xf32>
    %c1_13 = arith.constant 1 : index
    %c0_14 = arith.constant 0 : index
    %c0_15 = arith.constant 0 : index
    %22 = vector.load %arg5[%c1_13, %c0_14, %c0_15] : memref<2x256x128xbf16, #tpu.memory_space<vmem>>, vector<1x256x128xbf16>
    %23 = vector.shape_cast %22 : vector<1x256x128xbf16> to vector<256x128xbf16>
    %cst_16 = arith.constant dense<0.000000e+00> : vector<256x128xf32>
    %24 = tpu.matmul %10, %23, %cst_16 {dimension_numbers = #tpu.dot_dimension_numbers<[1], [0], [0], [1], [0, 0, 1, 1], [], []>} : vector<256x256xbf16>, vector<256x128xbf16>, vector<256x128xf32> -> vector<256x128xf32>
    %25 = arith.addf %21, %24 : vector<256x128xf32>
    %c1_17 = arith.constant 1 : index
    %c0_18 = arith.constant 0 : index
    %c0_19 = arith.constant 0 : index
    %26 = vector.load %arg7[%c1_17, %c0_18, %c0_19] : memref<2x256x128xf32, #tpu.memory_space<vmem>>, vector<1x256x128xf32>
    %27 = vector.shape_cast %26 : vector<1x256x128xf32> to vector<256x128xf32>
    %28 = vector.shape_cast %25 : vector<256x128xf32> to vector<1x256x128xf32>
    tpu.vector_store %arg7[%c1_17, %c0_18, %c0_19], %28 {strides = array<i32>} : memref<2x256x128xf32, #tpu.memory_space<vmem>>, vector<1x256x128xf32>,
    %29 = arith.cmpi eq, %3, %1 : i32
    %30 = arith.extui %29 : i1 to i32
    %c0_i32_20 = arith.constant 0 : i32
    %31 = arith.cmpi ne, %30, %c0_i32_20 : i32
    scf.if %31 {
      %c0_21 = arith.constant 0 : index
      %c0_22 = arith.constant 0 : index
      %c0_23 = arith.constant 0 : index
      %32 = vector.load %arg7[%c0_21, %c0_22, %c0_23] : memref<2x256x128xf32, #tpu.memory_space<vmem>>, vector<2x256x128xf32>
      %c0_24 = arith.constant 0 : index
      %c0_25 = arith.constant 0 : index
      %c0_26 = arith.constant 0 : index
      %33 = vector.load %arg6[%c0_24, %c0_25, %c0_26] : memref<2x256x128xf32, #tpu.memory_space<vmem>>, vector<2x256x128xf32>
      tpu.vector_store %arg6[%c0_24, %c0_25, %c0_26], %32 {strides = array<i32>} : memref<2x256x128xf32, #tpu.memory_space<vmem>>, vector<2x256x128xf32>,
    } else {
    }
    return
  }
  func.func @transform_0(%arg0: i32, %arg1: i32, %arg2: memref<3xi32, #tpu.memory_space<smem>>, %arg3: memref<3xi32, #tpu.memory_space<smem>>) -> (i32, i32, i32) {
    %c0_i32 = arith.constant 0 : i32
    %c0_i32_0 = arith.constant 0 : i32
    %c0_i32_1 = arith.constant 0 : i32
    %c0_i32_2 = arith.constant 0 : i32
    return %c0_i32, %c0_i32_0, %c0_i32_1 : i32, i32, i32
  }
  func.func @transform_1(%arg0: i32, %arg1: i32, %arg2: memref<3xi32, #tpu.memory_space<smem>>, %arg3: memref<3xi32, #tpu.memory_space<smem>>) -> (i32, i32, i32) {
    %0 = arith.index_cast %arg1 : i32 to index
    %1 = memref.load %arg3[%0] : memref<3xi32, #tpu.memory_space<smem>>
    %c0_i32 = arith.constant 0 : i32
    %c0_i32_0 = arith.constant 0 : i32
    return %c0_i32, %1, %arg0 : i32, i32, i32
  }
  func.func @transform_2(%arg0: i32, %arg1: i32, %arg2: memref<3xi32, #tpu.memory_space<smem>>, %arg3: memref<3xi32, #tpu.memory_space<smem>>) -> (i32, i32, i32) {
    %0 = arith.index_cast %arg1 : i32 to index
    %1 = memref.load %arg2[%0] : memref<3xi32, #tpu.memory_space<smem>>
    %c0_i32 = arith.constant 0 : i32
    %c0_i32_0 = arith.constant 0 : i32
    return %c0_i32, %1, %arg0 : i32, i32, i32
  }
}

</mosaic_0001>

<bundles_post_ra>
// kernel: s4d_layer_forward.1
= control target key start
LH: loop header
LB: loop body
LE: loop exit
PB: predicated region body
PF: predicated region fallthrough
CT: control target
= control target key end

     0   :  { %s2837_s0 = inlined_call_operand.vmem [shape: s32[3], index: 0, kind: input, shape index: {}]   ;;  %s2838_s2 = inlined_call_operand.vmem [shape: bf16[2,256,256], index: 2, kind: input, shape index: {}]   ;;  %s2839_s3 = inlined_call_operand.vmem [shape: bf16[2,512,128], index: 3, kind: input, shape index: {}]   ;;  %s2840_s4 = inlined_call_operand.hbm [shape: f32[2,512,128], index: 4, kind: output, shape index: {}]   ;;  %s2841_s1 = inlined_call_operand.vmem [shape: s32[3], index: 1, kind: input, shape index: {}]  }
   0x1   :  { %s9_s17 = sshll.u32 %s2837_s0, 4  ;;  %s13_s20 = sshll.u32 %s2841_s1, 4  ;;  %s10_s17 = int_to_ptr.vmem [resolvable:$true] %s9_s17  ;;  %s14_s20 = int_to_ptr.vmem [resolvable:$true] %s13_s20 }
   0x2   :  { %s2279_s21 = scalar_lea.vmem %s10_s17, 16  ;;  %p2284_p1 = scmp.lt.s32.totalorder %s10_s17, %s10_s17 }
   0x3   :  { %p2280_p0 = scmp.ne.s32.totalorder %s10_s17, %s2279_s21  ;;  %p2285_p2 = scmp.lt.s32.totalorder %s2279_s21, %s2279_s21 }
   0x5   :  { %p2286_p3 = por %p2285_p2, %p2284_p1 }
   0x7   :  { %p2287_p4 = pnand %p2286_p3, %p2280_p0 }
   0x9   :  { %2290 = shalt.err (!%p2287_p4)  }
   0xa   :  { %s2373_s22 = smov [#allocation4]   ;;  %s2291_s23 = scalar_lea.vmem %s14_s20, 16 }
   0xb   :  { %12 = dma.vmem_to_smem %s10_s17, 16, %s2373_s22, [#allocation3] }
   0xc   :  { %p2292_p5 = scmp.ne.s32.totalorder %s14_s20, %s2291_s23  ;;  %p2296_p6 = scmp.lt.s32.totalorder %s14_s20, %s14_s20 }
   0xd   :  { %p2297_p7 = scmp.lt.s32.totalorder %s2291_s23, %s2291_s23 }
   0xf   :  { %p2298_p8 = por %p2297_p7, %p2296_p6 }
  0x11   :  { %p2299_p9 = pnand %p2298_p8, %p2292_p5 }
  0x13   :  { %2302 = shalt.err (!%p2299_p9)  }
  0x14   :  { %s2374_s0 = smov [#allocation5]  }
  0x15   :  { %16 = dma.vmem_to_smem %s14_s20, 16, %s2374_s0, [#allocation3] }
  0x16   :  { %2335 = dma.done.wait [#allocation3], 32 }
  0x17   :  { %2336 = vsyncadd [#allocation3], 4294967264 }
  0x18   :  { %18 = sfence }
  0x19   :  { %19 = vsyncpa [#allocation8], 0 }
  0x1a   :  { %21 = vsyncpa [#allocation8 + $0x1], 0  ;;  %s2414_s1 = smov 0   ;;  %s2416_s24 = smov 0  }
  0x1b   :  { %s2418_s25 = smov 0   ;;  %s2420_s26 = smov 0  }
  0x1c   :  { %s2422_s27 = smov 0   ;;  %s2424_s28 = smov 0  }
  0x1d   :  { %s2426_s29 = smov 0   ;;  %s2428_s30 = smov 0  }
  0x1e LB: > { %s1768_s5 = sadd.s32 4294967295, %s2371_s30   ;;  %s36_s6 = sadd.s32 1, %s2367_s29  ;;  %s2371_s30 = sphi %s2428_s30, %s27_s30   ;;  %s2367_s29 = sphi %s2426_s29, %s2851_s29   ;;  %s2363_s28 = sphi %s2424_s28, %s2850_s28   ;;  %s2359_s27 = sphi %s2422_s27, %s2849_s27   ;;  %s2355_s26 = sphi %s2420_s26, %s2848_s26   ;;  %s2351_s25 = sphi %s2418_s25, %s2847_s25   ;;  %s2347_s24 = sphi %s2416_s24, %s2846_s24   ;;  %s2343_s1 = sphi %s2414_s1, %s2845_s1  }
  0x1f   : > { %p37_p10 = scmp.ge.s32.totalorder %s36_s6, 3  ;;  %s64_s7 = sld [smem:[#allocation5 + %s2367_s29]] }
  0x20   : > { %p78_p11 = scmp.ne.s32.totalorder %s2359_s27, %s2355_s26  ;;  %p79_p12 = scmp.eq.s32.totalorder %s2371_s30, 0 }
  0x21   : > { %s2853_s6 = smov (%p37_p10, %s36_s6), 0  ;;  %s94_s9 = sld [smem:[#allocation4 + %s2367_s29]] }
  0x22   : > { %p2462_p13 = por %p79_p12, %p78_p11  ;;  %s1769_s10 = sadd.s32 4294967294, %s2371_s30  }
  0x23   : > { %s65_s11 = sld [smem:[#allocation5 + %s2853_s6]]  ;;  %p111_p0 = scmp.ne.s32.totalorder %s2351_s25, %s2347_s24 }
  0x24   : > { %s95_s12 = sld [smem:[#allocation4 + %s2853_s6]]  ;;  %p112_p1 = scmp.eq.s32.totalorder %s1768_s5, 2 }
  0x25   : > { %p117_p2 = scmp.ne.s32.totalorder %s2347_s24, %s2343_s1  ;;  %p118_p3 = scmp.eq.s32.totalorder %s1769_s10, 2 }
  0x26   : > { %p2474_p4 = por %p112_p1, %p111_p0  ;;  %s71_s14 = sadd.s32 1, %s2359_s27 }
  0x27   : > { %p2479_p5 = por %p118_p3, %p117_p2  ;;  %s101_s17 = sadd.s32 1, %s2351_s25 }
  0x28   : > { %p1771_p8 = scmp.ge.s32.totalorder %s2371_s30, 3 }
  0x29   : > { %s66_s16 = ssub.s32 %s64_s7, %s65_s11 }
  0x2a   : > { %p69_p6 = scmp.eq.s32.totalorder %s66_s16, 0  ;;  %s96_s18 = ssub.s32 %s94_s9, %s95_s12 }
  0x2b   : > { %p99_p7 = scmp.eq.s32.totalorder %s96_s18, 0  ;;  %137 = sbr.rel (%p1771_p8) target bundleno = 74 (0x4a), region = 20 }
  0x2c   : > { %s2485_s19 = scalar_select %p69_p6, %s2359_s27, %s71_s14  }
  0x2d   : > { %s2488_s20 = scalar_select %p99_p7, %s2351_s25, %s101_s17  }
  0x30   : > { %140 = sbr.rel (!%p2462_p13) target bundleno = 74 (0x4a), region = 24  ;;  %s142_s21 = sand.u32 (%p2462_p13), 1, %s2359_s27  }
  0x31   : > { %s145_s22 = sld [smem:[#allocation5 + %s2367_s29]] (%p2462_p13)  ;;  %s1772_s23 = sshll.u32 (%p2462_p13), %s142_s21, 8 }
  0x32   : > { %s2503_s8 = scalar_lea.vmem (%p2462_p13), [#allocation6], %s1772_s23 }
  0x37   : > { %s1883_s0 = sshll.u32 %s145_s22, 7 }
  0x38   : > { %s2498_s9 = scalar_lea.vmem %s2839_s3, %s1883_s0 }
  0x39   : > { %v166_v0 = vld [vmem:[%s2498_s9] sm:$0xff]   ;;  %v170_v1 = vld [vmem:[%s2498_s9 + $0x8] sm:$0xff]   ;;  %v174_v2 = vld [vmem:[%s2498_s9 + $0x10] sm:$0xff]  }
  0x3a   : > { %167 = vst [vmem:[%s2503_s8] sm:$0xff] %v166_v0   ;;  %171 = vst [vmem:[%s2503_s8 + $0x8] sm:$0xff] %v170_v1   ;;  %v178_v3 = vld [vmem:[%s2498_s9 + $0x18] sm:$0xff]   ;;  %v182_v4 = vld [vmem:[%s2498_s9 + $0x20] sm:$0xff]  }
  0x3b   : > { %175 = vst [vmem:[%s2503_s8 + $0x10] sm:$0xff] %v174_v2   ;;  %v186_v5 = vld [vmem:[%s2498_s9 + $0x28] sm:$0xff]   ;;  %179 = vst [vmem:[%s2503_s8 + $0x18] sm:$0xff] %v178_v3   ;;  %v190_v6 = vld [vmem:[%s2498_s9 + $0x30] sm:$0xff]  }
  0x3c   : > { %183 = vst [vmem:[%s2503_s8 + $0x20] sm:$0xff] %v182_v4   ;;  %187 = vst [vmem:[%s2503_s8 + $0x28] sm:$0xff] %v186_v5   ;;  %v194_v7 = vld [vmem:[%s2498_s9 + $0x38] sm:$0xff]   ;;  %v198_v8 = vld [vmem:[%s2498_s9 + $0x40] sm:$0xff]  }
  0x3d   : > { %191 = vst [vmem:[%s2503_s8 + $0x30] sm:$0xff] %v190_v6   ;;  %195 = vst [vmem:[%s2503_s8 + $0x38] sm:$0xff] %v194_v7   ;;  %v202_v9 = vld [vmem:[%s2498_s9 + $0x48] sm:$0xff]   ;;  %v206_v10 = vld [vmem:[%s2498_s9 + $0x50] sm:$0xff]  }
  0x3e   : > { %199 = vst [vmem:[%s2503_s8 + $0x40] sm:$0xff] %v198_v8   ;;  %v210_v11 = vld [vmem:[%s2498_s9 + $0x58] sm:$0xff]   ;;  %203 = vst [vmem:[%s2503_s8 + $0x48] sm:$0xff] %v202_v9   ;;  %v214_v12 = vld [vmem:[%s2498_s9 + $0x60] sm:$0xff]  }
  0x3f   : > { %207 = vst [vmem:[%s2503_s8 + $0x50] sm:$0xff] %v206_v10   ;;  %211 = vst [vmem:[%s2503_s8 + $0x58] sm:$0xff] %v210_v11   ;;  %v218_v13 = vld [vmem:[%s2498_s9 + $0x68] sm:$0xff]   ;;  %v222_v14 = vld [vmem:[%s2498_s9 + $0x70] sm:$0xff]  }
  0x40   : > { %215 = vst [vmem:[%s2503_s8 + $0x60] sm:$0xff] %v214_v12   ;;  %219 = vst [vmem:[%s2503_s8 + $0x68] sm:$0xff] %v218_v13   ;;  %v226_v15 = vld [vmem:[%s2498_s9 + $0x78] sm:$0xff]   ;;  %v230_v16 = vld [vmem:[%s2498_s9 + $0x100] sm:$0xff]  }
  0x41   : > { %223 = vst [vmem:[%s2503_s8 + $0x70] sm:$0xff] %v222_v14   ;;  %v234_v17 = vld [vmem:[%s2498_s9 + $0x108] sm:$0xff]   ;;  %227 = vst [vmem:[%s2503_s8 + $0x78] sm:$0xff] %v226_v15   ;;  %v238_v18 = vld [vmem:[%s2498_s9 + $0x110] sm:$0xff]  }
  0x42   : > { %231 = vst [vmem:[%s2503_s8 + $0x80] sm:$0xff] %v230_v16   ;;  %235 = vst [vmem:[%s2503_s8 + $0x88] sm:$0xff] %v234_v17   ;;  %v242_v19 = vld [vmem:[%s2498_s9 + $0x118] sm:$0xff]   ;;  %v246_v20 = vld [vmem:[%s2498_s9 + $0x120] sm:$0xff]  }
  0x43   : > { %239 = vst [vmem:[%s2503_s8 + $0x90] sm:$0xff] %v238_v18   ;;  %243 = vst [vmem:[%s2503_s8 + $0x98] sm:$0xff] %v242_v19   ;;  %v250_v21 = vld [vmem:[%s2498_s9 + $0x128] sm:$0xff]   ;;  %v254_v22 = vld [vmem:[%s2498_s9 + $0x130] sm:$0xff]  }
  0x44   : > { %247 = vst [vmem:[%s2503_s8 + $0xa0] sm:$0xff] %v246_v20   ;;  %v258_v23 = vld [vmem:[%s2498_s9 + $0x138] sm:$0xff]   ;;  %251 = vst [vmem:[%s2503_s8 + $0xa8] sm:$0xff] %v250_v21   ;;  %v262_v24 = vld [vmem:[%s2498_s9 + $0x140] sm:$0xff]  }
  0x45   : > { %255 = vst [vmem:[%s2503_s8 + $0xb0] sm:$0xff] %v254_v22   ;;  %259 = vst [vmem:[%s2503_s8 + $0xb8] sm:$0xff] %v258_v23   ;;  %v266_v25 = vld [vmem:[%s2498_s9 + $0x148] sm:$0xff]   ;;  %v270_v26 = vld [vmem:[%s2498_s9 + $0x150] sm:$0xff]  }
  0x46   : > { %263 = vst [vmem:[%s2503_s8 + $0xc0] sm:$0xff] %v262_v24   ;;  %267 = vst [vmem:[%s2503_s8 + $0xc8] sm:$0xff] %v266_v25   ;;  %v274_v27 = vld [vmem:[%s2498_s9 + $0x158] sm:$0xff]   ;;  %v278_v28 = vld [vmem:[%s2498_s9 + $0x160] sm:$0xff]  }
  0x47   : > { %271 = vst [vmem:[%s2503_s8 + $0xd0] sm:$0xff] %v270_v26   ;;  %v282_v29 = vld [vmem:[%s2498_s9 + $0x168] sm:$0xff]   ;;  %275 = vst [vmem:[%s2503_s8 + $0xd8] sm:$0xff] %v274_v27   ;;  %v286_v30 = vld [vmem:[%s2498_s9 + $0x170] sm:$0xff]  }
  0x48   : > { %279 = vst [vmem:[%s2503_s8 + $0xe0] sm:$0xff] %v278_v28   ;;  %283 = vst [vmem:[%s2503_s8 + $0xe8] sm:$0xff] %v282_v29   ;;  %v290_v31 = vld [vmem:[%s2498_s9 + $0x178] sm:$0xff]  }
  0x49   : > { %287 = vst [vmem:[%s2503_s8 + $0xf0] sm:$0xff] %v286_v30   ;;  %291 = vst [vmem:[%s2503_s8 + $0xf8] sm:$0xff] %v290_v31  }
  0x4a PF: > { %p1775_p9 = scmp.ge.s32.totalorder %s2371_s30, 1  ;;  %p444_p10 = scmp.lt.s32.totalorder %s2371_s30, 4 }
  0x4c   : > { %p445_p11 = pnand %p1775_p9, %p444_p10 }
  0x4d   : > { %s451_s10 = sand.u32 (!%p445_p11), 1, %s2355_s26   ;;  %s469_s11 = sand.u32 (!%p445_p11), 1, %s2347_s24  }
  0x4e   : > { %448 = sbr.rel (%p445_p11) target bundleno = 530 (0x212), region = 65  ;;  %s1776_s12 = sshll.u32 (!%p445_p11), %s451_s10, 8 }
  0x4f   : > { %s1777_s14 = sshll.u32 (!%p445_p11), %s469_s11, 9  ;;  %s2573_s16 = sld [smem:[#allocation4 + %s2363_s28]] (!%p445_p11) }
  0x50   : > { %s2576_s17 = sld [smem:[#allocation5 + %s2363_s28]] (!%p445_p11)  ;;  %s2578_s18 = scalar_lea.vmem (!%p445_p11), [#allocation6], %s1776_s12 }
  0x51   : > { %s2580_s21 = scalar_lea.vmem (!%p445_p11), [#allocation7], %s1777_s14 }
  0x56   : > { %p1778_p12 = scmp.ne.s32.totalorder %s2576_s17, 0 }
  0x58   : > { %482 = sbr.rel (%p1778_p12) target bundleno = 126 (0x7e), region = 73 }
  0x5d   : > { %v2375_v32 = vmov 0.0  }
  0x5e   : > { %483 = vst [vmem:[#allocation2 + $0xb0] sm:$0xff] %v2375_v32  ;;  %484 = vst [vmem:[#allocation2 + $0x1b0] sm:$0xff] %v2375_v32 }
  0x5f   : > { %485 = vst [vmem:[#allocation2 + $0xd8] sm:$0xff] %v2375_v32  ;;  %486 = vst [vmem:[#allocation2 + $0x18] sm:$0xff] %v2375_v32 }
  0x60   : > { %487 = vst [vmem:[#allocation2 + $0x50] sm:$0xff] %v2375_v32  ;;  %488 = vst [vmem:[#allocation2 + $0x168] sm:$0xff] %v2375_v32 }
  0x61   : > { %489 = vst [vmem:[#allocation2 + $0x130] sm:$0xff] %v2375_v32  ;;  %490 = vst [vmem:[#allocation2 + $0x48] sm:$0xff] %v2375_v32 }
  0x62   : > { %491 = vst [vmem:[#allocation2 + $0x180] sm:$0xff] %v2375_v32  ;;  %492 = vst [vmem:[#allocation2 + $0x110] sm:$0xff] %v2375_v32 }
  0x63   : > { %493 = vst [vmem:[#allocation2 + $0x118] sm:$0xff] %v2375_v32  ;;  %494 = vst [vmem:[#allocation2 + $0x98] sm:$0xff] %v2375_v32 }
  0x64   : > { %495 = vst [vmem:[#allocation2 + $0x120] sm:$0xff] %v2375_v32  ;;  %496 = vst [vmem:[#allocation2 + $0x150] sm:$0xff] %v2375_v32 }
  0x65   : > { %497 = vst [vmem:[#allocation2 + $0x108] sm:$0xff] %v2375_v32  ;;  %498 = vst [vmem:[#allocation2 + $0x60] sm:$0xff] %v2375_v32 }
  0x66   : > { %499 = vst [vmem:[#allocation2 + $0xe0] sm:$0xff] %v2375_v32  ;;  %500 = vst [vmem:[#allocation2 + $0x188] sm:$0xff] %v2375_v32 }
  0x67   : > { %501 = vst [vmem:[#allocation2 + $0x138] sm:$0xff] %v2375_v32  ;;  %502 = vst [vmem:[#allocation2 + $0x140] sm:$0xff] %v2375_v32 }
  0x68   : > { %503 = vst [vmem:[#allocation2 + $0x80] sm:$0xff] %v2375_v32  ;;  %504 = vst [vmem:[#allocation2 + $0x1a8] sm:$0xff] %v2375_v32 }
  0x69   : > { %505 = vst [vmem:[#allocation2 + $0x1b8] sm:$0xff] %v2375_v32  ;;  %506 = vst [vmem:[#allocation2 + $0x28] sm:$0xff] %v2375_v32 }
  0x6a   : > { %507 = vst [vmem:[#allocation2 + $0x1e8] sm:$0xff] %v2375_v32  ;;  %508 = vst [vmem:[#allocation2 + $0xf8] sm:$0xff] %v2375_v32 }
  0x6b   : > { %509 = vst [vmem:[#allocation2 + $0x160] sm:$0xff] %v2375_v32  ;;  %510 = vst [vmem:[#allocation2 + $0x30] sm:$0xff] %v2375_v32 }
  0x6c   : > { %511 = vst [vmem:[#allocation2 + $0x1e0] sm:$0xff] %v2375_v32  ;;  %512 = vst [vmem:[#allocation2] sm:$0xff] %v2375_v32 }
  0x6d   : > { %513 = vst [vmem:[#allocation2 + $0xf0] sm:$0xff] %v2375_v32  ;;  %514 = vst [vmem:[#allocation2 + $0x8] sm:$0xff] %v2375_v32 }
  0x6e   : > { %515 = vst [vmem:[#allocation2 + $0x148] sm:$0xff] %v2375_v32  ;;  %516 = vst [vmem:[#allocation2 + $0x1d0] sm:$0xff] %v2375_v32 }
  0x6f   : > { %517 = vst [vmem:[#allocation2 + $0x100] sm:$0xff] %v2375_v32  ;;  %518 = vst [vmem:[#allocation2 + $0xc8] sm:$0xff] %v2375_v32 }
  0x70   : > { %519 = vst [vmem:[#allocation2 + $0x40] sm:$0xff] %v2375_v32  ;;  %520 = vst [vmem:[#allocation2 + $0x1f8] sm:$0xff] %v2375_v32 }
  0x71   : > { %521 = vst [vmem:[#allocation2 + $0x20] sm:$0xff] %v2375_v32  ;;  %522 = vst [vmem:[#allocation2 + $0x128] sm:$0xff] %v2375_v32 }
  0x72   : > { %523 = vst [vmem:[#allocation2 + $0x1a0] sm:$0xff] %v2375_v32  ;;  %524 = vst [vmem:[#allocation2 + $0x1f0] sm:$0xff] %v2375_v32 }
  0x73   : > { %525 = vst [vmem:[#allocation2 + $0xe8] sm:$0xff] %v2375_v32  ;;  %526 = vst [vmem:[#allocation2 + $0x78] sm:$0xff] %v2375_v32 }
  0x74   : > { %527 = vst [vmem:[#allocation2 + $0x70] sm:$0xff] %v2375_v32  ;;  %528 = vst [vmem:[#allocation2 + $0x90] sm:$0xff] %v2375_v32 }
  0x75   : > { %529 = vst [vmem:[#allocation2 + $0x1d8] sm:$0xff] %v2375_v32  ;;  %530 = vst [vmem:[#allocation2 + $0xd0] sm:$0xff] %v2375_v32 }
  0x76   : > { %531 = vst [vmem:[#allocation2 + $0xb8] sm:$0xff] %v2375_v32  ;;  %532 = vst [vmem:[#allocation2 + $0x88] sm:$0xff] %v2375_v32 }
  0x77   : > { %533 = vst [vmem:[#allocation2 + $0xa8] sm:$0xff] %v2375_v32  ;;  %534 = vst [vmem:[#allocation2 + $0x1c8] sm:$0xff] %v2375_v32 }
  0x78   : > { %535 = vst [vmem:[#allocation2 + $0x170] sm:$0xff] %v2375_v32  ;;  %536 = vst [vmem:[#allocation2 + $0x178] sm:$0xff] %v2375_v32 }
  0x79   : > { %537 = vst [vmem:[#allocation2 + $0x68] sm:$0xff] %v2375_v32  ;;  %538 = vst [vmem:[#allocation2 + $0x190] sm:$0xff] %v2375_v32 }
  0x7a   : > { %539 = vst [vmem:[#allocation2 + $0x198] sm:$0xff] %v2375_v32  ;;  %540 = vst [vmem:[#allocation2 + $0x38] sm:$0xff] %v2375_v32 }
  0x7b   : > { %541 = vst [vmem:[#allocation2 + $0xc0] sm:$0xff] %v2375_v32  ;;  %542 = vst [vmem:[#allocation2 + $0x1c0] sm:$0xff] %v2375_v32 }
  0x7c   : > { %543 = vst [vmem:[#allocation2 + $0x158] sm:$0xff] %v2375_v32  ;;  %544 = vst [vmem:[#allocation2 + $0x10] sm:$0xff] %v2375_v32 }
  0x7d   : > { %545 = vst [vmem:[#allocation2 + $0x58] sm:$0xff] %v2375_v32  ;;  %546 = vst [vmem:[#allocation2 + $0xa0] sm:$0xff] %v2375_v32 }
  0x7e PF: > { %v2199_v33 = vld [vmem:[%s2578_s18 + $0x78] sm:$0xff]   ;;  %v2203_v37 = vld [vmem:[%s2578_s18 + $0x70] sm:$0xff]   ;;  %v2207_v41 = vld [vmem:[%s2578_s18 + $0x68] sm:$0xff]   ;;  %s547_s26 = ssub.s32 %s2573_s16, %s2576_s17  ;;  %p1877_p13 = scmp.ne.s32.totalorder %s2576_s17, %s2573_s16 }
  0x7f   : > { %v2200_v34 = vld [vmem:[%s2578_s18 + $0xf8] sm:$0xff]   ;;  %1886 = vmatprep.subr.bf16.mxu0 %v2199_v33  ;;  %v2204_v38 = vld [vmem:[%s2578_s18 + $0xf0] sm:$0xff]   ;;  %v2208_v42 = vld [vmem:[%s2578_s18 + $0xe8] sm:$0xff]   ;;  %s1884_s22 = sshll.u32 %s547_s26, 8 }
  0x80   : > { %v2201_v35 = vld [vmem:[%s2578_s18 + $0x38] sm:$0xff]   ;;  %1998 = vmatprep.subr.bf16.mxu1 %v2200_v34  ;;  %v2205_v39 = vld [vmem:[%s2578_s18 + $0x30] sm:$0xff]   ;;  %v2209_v43 = vld [vmem:[%s2578_s18 + $0x28] sm:$0xff]   ;;  %s2682_s5 = scalar_lea.vmem %s2838_s2, %s1884_s22 }
  0x81   : > { %v2202_v36 = vld [vmem:[%s2578_s18 + $0xb8] sm:$0xff]   ;;  %1887 = vmatpush3.bf16.msra.mxu0 %v2201_v35  ;;  %v2206_v40 = vld [vmem:[%s2578_s18 + $0xb0] sm:$0xff]   ;;  %v2210_v44 = vld [vmem:[%s2578_s18 + $0xa8] sm:$0xff]  }
  0x82   : > { %1999 = vmatpush3.bf16.msra.mxu1 %v2202_v36  ;;  %1888 = vmatprep.subr.bf16.mxu0 %v2203_v37  ;;  %v2211_v45 = vld [vmem:[%s2578_s18 + $0x60] sm:$0xff]   ;;  %v2215_v49 = vld [vmem:[%s2578_s18 + $0x58] sm:$0xff]   ;;  %v2219_v53 = vld [vmem:[%s2578_s18 + $0x50] sm:$0xff]  }
  0x83   : > { %2000 = vmatprep.subr.bf16.mxu1 %v2204_v38  ;;  %v2212_v46 = vld [vmem:[%s2578_s18 + $0xe0] sm:$0xff]   ;;  %v2216_v50 = vld [vmem:[%s2578_s18 + $0xd8] sm:$0xff]   ;;  %v2220_v54 = vld [vmem:[%s2578_s18 + $0xd0] sm:$0xff]  }
  0x84   : > { %v2213_v47 = vld [vmem:[%s2578_s18 + $0x20] sm:$0xff]   ;;  %v2217_v51 = vld [vmem:[%s2578_s18 + $0x18] sm:$0xff]   ;;  %v2221_v55 = vld [vmem:[%s2578_s18 + $0x10] sm:$0xff]  }
  0x85   : > { %1889 = vmatpush3.bf16.msra.mxu0 %v2205_v39  ;;  %v2214_v48 = vld [vmem:[%s2578_s18 + $0xa0] sm:$0xff]   ;;  %v2218_v52 = vld [vmem:[%s2578_s18 + $0x98] sm:$0xff]   ;;  %v2222_v56 = vld [vmem:[%s2578_s18 + $0x90] sm:$0xff]  }
  0x86   : > { %2001 = vmatpush3.bf16.msra.mxu1 %v2206_v40  ;;  %1890 = vmatprep.subr.bf16.mxu0 %v2207_v41  ;;  %v2223_v57 = vld [vmem:[%s2578_s18 + $0x48] sm:$0xff]   ;;  %v2227_v61 = vld [vmem:[%s2578_s18 + $0x40] sm:$0xff]   ;;  %v2234_v3 = vld [vmem:[%s2682_s5 + $0x14] ss:$8 sps:$4 sm:$0xff]  }
  0x87   : > { %2002 = vmatprep.subr.bf16.mxu1 %v2208_v42  ;;  %v2224_v58 = vld [vmem:[%s2578_s18 + $0xc8] sm:$0xff]   ;;  %v2228_v62 = vld [vmem:[%s2578_s18 + $0xc0] sm:$0xff]   ;;  %v2236_v4 = vld [vmem:[%s2682_s5 + $0x10] ss:$8 sps:$4 sm:$0xff]  }
  0x88   : > { %v2225_v59 = vld [vmem:[%s2578_s18 + $0x8] sm:$0xff]   ;;  %v2229_v63 = vld [vmem:[%s2578_s18] sm:$0xff]   ;;  %v2240_v7 = vld [vmem:[%s2682_s5 + $0x34] ss:$8 sps:$4 sm:$0xff]  }
  0x89   : > { %1891 = vmatpush3.bf16.msra.mxu0 %v2209_v43  ;;  %v2226_v60 = vld [vmem:[%s2578_s18 + $0x88] sm:$0xff]   ;;  %v2230_v0 = vld [vmem:[%s2578_s18 + $0x80] sm:$0xff]   ;;  %v2242_v8 = vld [vmem:[%s2682_s5 + $0x30] ss:$8 sps:$4 sm:$0xff]  }
  0x8a   : > { %2003 = vmatpush3.bf16.msra.mxu1 %v2210_v44  ;;  %1892 = vmatprep.subr.bf16.mxu0 %v2211_v45  ;;  %v2231_v1 = vld [vmem:[%s2682_s5] ss:$8 sps:$4 sm:$0xff]   ;;  %v2233_v2 = vld [vmem:[%s2682_s5 + $0x4] ss:$8 sps:$4 sm:$0xff]   ;;  %v2246_v11 = vld [vmem:[%s2682_s5 + $0x54] ss:$8 sps:$4 sm:$0xff]  }
  0x8b   : > { %2004 = vmatprep.subr.bf16.mxu1 %v2212_v46  ;;  %935 = vmatprep.mubr.bf16.mxu0 %v2233_v2  ;;  %v2237_v5 = vld [vmem:[%s2682_s5 + $0x24] ss:$8 sps:$4 sm:$0xff]   ;;  %v2239_v6 = vld [vmem:[%s2682_s5 + $0x20] ss:$8 sps:$4 sm:$0xff]   ;;  %v2248_v12 = vld [vmem:[%s2682_s5 + $0x50] ss:$8 sps:$4 sm:$0xff]  }
  0x8c   : > { %1322 = vmatprep.mubr.bf16.mxu1 %v2233_v2  ;;  %v2243_v9 = vld [vmem:[%s2682_s5 + $0x44] ss:$8 sps:$4 sm:$0xff]   ;;  %v2245_v10 = vld [vmem:[%s2682_s5 + $0x40] ss:$8 sps:$4 sm:$0xff]   ;;  %v2252_v15 = vld [vmem:[%s2682_s5 + $0x74] ss:$8 sps:$4 sm:$0xff]  }
  0x8d   : > { %1893 = vmatpush3.bf16.msra.mxu0 %v2213_v47  ;;  %v2249_v13 = vld [vmem:[%s2682_s5 + $0x64] ss:$8 sps:$4 sm:$0xff]   ;;  %v2251_v14 = vld [vmem:[%s2682_s5 + $0x60] ss:$8 sps:$4 sm:$0xff]   ;;  %v2254_v16 = vld [vmem:[%s2682_s5 + $0x70] ss:$8 sps:$4 sm:$0xff]  }
  0x8e   : > { %2005 = vmatpush3.bf16.msra.mxu1 %v2214_v48  ;;  %1894 = vmatprep.subr.bf16.mxu0 %v2215_v49  ;;  %v2255_v17 = vld [vmem:[%s2682_s5 + $0x84] ss:$8 sps:$4 sm:$0xff]   ;;  %v2257_v18 = vld [vmem:[%s2682_s5 + $0x80] ss:$8 sps:$4 sm:$0xff]   ;;  %v2258_v19 = vld [vmem:[%s2682_s5 + $0x94] ss:$8 sps:$4 sm:$0xff]  }
  0x8f   : > { %2006 = vmatprep.subr.bf16.mxu1 %v2216_v50  ;;  %v2260_v20 = vld [vmem:[%s2682_s5 + $0x90] ss:$8 sps:$4 sm:$0xff]   ;;  %v2261_v21 = vld [vmem:[%s2682_s5 + $0xa4] ss:$8 sps:$4 sm:$0xff]   ;;  %v2263_v22 = vld [vmem:[%s2682_s5 + $0xa0] ss:$8 sps:$4 sm:$0xff]  }
  0x90   : > { %v2264_v23 = vld [vmem:[%s2682_s5 + $0xb4] ss:$8 sps:$4 sm:$0xff]   ;;  %v2266_v24 = vld [vmem:[%s2682_s5 + $0xb0] ss:$8 sps:$4 sm:$0xff]   ;;  %v2267_v25 = vld [vmem:[%s2682_s5 + $0xc4] ss:$8 sps:$4 sm:$0xff]  }
  0x91   : > { %1895 = vmatpush3.bf16.msra.mxu0 %v2217_v51  ;;  %v2269_v26 = vld [vmem:[%s2682_s5 + $0xc0] ss:$8 sps:$4 sm:$0xff]   ;;  %v2270_v27 = vld [vmem:[%s2682_s5 + $0xd4] ss:$8 sps:$4 sm:$0xff]   ;;  %v2272_v28 = vld [vmem:[%s2682_s5 + $0xd0] ss:$8 sps:$4 sm:$0xff]  }
  0x92   : > { %2007 = vmatpush3.bf16.msra.mxu1 %v2218_v52  ;;  %1896 = vmatprep.subr.bf16.mxu0 %v2219_v53  ;;  %v2273_v29 = vld [vmem:[%s2682_s5 + $0xe4] ss:$8 sps:$4 sm:$0xff]   ;;  %v2275_v30 = vld [vmem:[%s2682_s5 + $0xe0] ss:$8 sps:$4 sm:$0xff]   ;;  %v2276_v31 = vld [vmem:[%s2682_s5 + $0xf4] ss:$8 sps:$4 sm:$0xff]  }
  0x93   : > { %2008 = vmatprep.subr.bf16.mxu1 %v2220_v54  ;;  %v2278_v32 = vld [vmem:[%s2682_s5 + $0xf0] ss:$8 sps:$4 sm:$0xff]   ;;  %v1129_v37 = vld [vmem:[#allocation2 + $0x148] sm:$0xff] }
  0x94   : > { %v583_v35 = vld [vmem:[#allocation2 + $0xb0] sm:$0xff] }
  0x95   : > { %1897 = vmatpush3.bf16.msra.mxu0 %v2221_v55  ;;  %v584_v45 = vld [vmem:[#allocation2 + $0x1b0] sm:$0xff]  ;;  %v585_v55 = vld [vmem:[#allocation2 + $0xd8] sm:$0xff] }
  0x96   : > { %2009 = vmatpush3.bf16.msra.mxu1 %v2222_v56  ;;  %1898 = vmatprep.subr.bf16.mxu0 %v2223_v57  ;;  %v1130_v47 = vld [vmem:[#allocation2 + $0x1d0] sm:$0xff]  ;;  %v1131_v57 = vld [vmem:[#allocation2 + $0x100] sm:$0xff] }
  0x97   : > { %2010 = vmatprep.subr.bf16.mxu1 %v2224_v58 }
  0x99   : > { %1899 = vmatpush3.bf16.msra.mxu0 %v2225_v59 }
  0x9a   : > { %2011 = vmatpush3.bf16.msra.mxu1 %v2226_v60  ;;  %1900 = vmatprep.subr.bf16.mxu0 %v2227_v61 }
  0x9b   : > { %2012 = vmatprep.subr.bf16.mxu1 %v2228_v62 }
  0x9d   : > { %1901 = vmatpush3.bf16.msra.mxu0 %v2229_v63 }
  0x9e   : > { %2013 = vmatpush3.bf16.msra.mxu1 %v2230_v0 }
  0xa0   : > { %936 = vmatmul.mubr.bf16.vlgmr.msra.gmra.mxu0 %v2231_v1 }
  0xa1   : > { %1323 = vmatmul.mubr.bf16.vlgmr.msra.gmra.mxu1 %v2231_v1  ;;  %943 = vmatprep.mubr.bf16.mxu0 %v2234_v3  ;;  %v586_v1 = vld [vmem:[#allocation2 + $0x18] sm:$0xff] }
  0xa2   : > { %1330 = vmatprep.mubr.bf16.mxu1 %v2234_v3  ;;  %v1132_v3 = vld [vmem:[#allocation2 + $0xc8] sm:$0xff] }
  0xa8   : > { %944 = vmatmul.mubr.bf16.gmra.mxu0 %v2236_v4 }
  0xa9   : > { %1331 = vmatmul.mubr.bf16.gmra.mxu1 %v2236_v4  ;;  %951 = vmatprep.mubr.bf16.mxu0 %v2237_v5 }
  0xaa   : > { %1338 = vmatprep.mubr.bf16.mxu1 %v2237_v5 }
  0xb0   : > { %952 = vmatmul.mubr.bf16.gmra.mxu0 %v2239_v6 }
  0xb1   : > { %1339 = vmatmul.mubr.bf16.gmra.mxu1 %v2239_v6  ;;  %959 = vmatprep.mubr.bf16.mxu0 %v2240_v7 }
  0xb2   : > { %1346 = vmatprep.mubr.bf16.mxu1 %v2240_v7 }
  0xb8   : > { %960 = vmatmul.mubr.bf16.gmra.mxu0 %v2242_v8 }
  0xb9   : > { %1347 = vmatmul.mubr.bf16.gmra.mxu1 %v2242_v8  ;;  %967 = vmatprep.mubr.bf16.mxu0 %v2243_v9 }
  0xba   : > { %1354 = vmatprep.mubr.bf16.mxu1 %v2243_v9 }
  0xc0   : > { %968 = vmatmul.mubr.bf16.gmra.mxu0 %v2245_v10 }
  0xc1   : > { %1355 = vmatmul.mubr.bf16.gmra.mxu1 %v2245_v10  ;;  %975 = vmatprep.mubr.bf16.mxu0 %v2246_v11 }
  0xc2   : > { %1362 = vmatprep.mubr.bf16.mxu1 %v2246_v11  ;;  %v587_v11 = vld [vmem:[#allocation2 + $0x50] sm:$0xff] }
  0xc8   : > { %976 = vmatmul.mubr.bf16.gmra.mxu0 %v2248_v12 }
  0xc9   : > { %1363 = vmatmul.mubr.bf16.gmra.mxu1 %v2248_v12  ;;  %983 = vmatprep.mubr.bf16.mxu0 %v2249_v13 }
  0xca   : > { %1370 = vmatprep.mubr.bf16.mxu1 %v2249_v13  ;;  %v1133_v13 = vld [vmem:[#allocation2 + $0x40] sm:$0xff] }
  0xd0   : > { %984 = vmatmul.mubr.bf16.gmra.mxu0 %v2251_v14 }
  0xd1   : > { %1371 = vmatmul.mubr.bf16.gmra.mxu1 %v2251_v14  ;;  %991 = vmatprep.mubr.bf16.mxu0 %v2252_v15 }
  0xd2   : > { %1378 = vmatprep.mubr.bf16.mxu1 %v2252_v15 }
  0xd8   : > { %992 = vmatmul.mubr.bf16.gmra.mxu0 %v2254_v16 }
  0xd9   : > { %1379 = vmatmul.mubr.bf16.gmra.mxu1 %v2254_v16  ;;  %999 = vmatprep.mubr.bf16.mxu0 %v2255_v17 }
  0xda   : > { %1386 = vmatprep.mubr.bf16.mxu1 %v2255_v17 }
  0xe0   : > { %1000 = vmatmul.mubr.bf16.gmra.mxu0 %v2257_v18 }
  0xe1   : > { %1387 = vmatmul.mubr.bf16.gmra.mxu1 %v2257_v18  ;;  %1007 = vmatprep.mubr.bf16.mxu0 %v2258_v19 }
  0xe2   : > { %1394 = vmatprep.mubr.bf16.mxu1 %v2258_v19 }
  0xe8   : > { %1008 = vmatmul.mubr.bf16.gmra.mxu0 %v2260_v20 }
  0xe9   : > { %1395 = vmatmul.mubr.bf16.gmra.mxu1 %v2260_v20  ;;  %1015 = vmatprep.mubr.bf16.mxu0 %v2261_v21 }
  0xea   : > { %1402 = vmatprep.mubr.bf16.mxu1 %v2261_v21  ;;  %v588_v21 = vld [vmem:[#allocation2 + $0x168] sm:$0xff] }
  0xf0   : > { %1016 = vmatmul.mubr.bf16.gmra.mxu0 %v2263_v22 }
  0xf1   : > { %1403 = vmatmul.mubr.bf16.gmra.mxu1 %v2263_v22  ;;  %1023 = vmatprep.mubr.bf16.mxu0 %v2264_v23 }
  0xf2   : > { %1410 = vmatprep.mubr.bf16.mxu1 %v2264_v23  ;;  %v1134_v23 = vld [vmem:[#allocation2 + $0x1f8] sm:$0xff] }
  0xf8   : > { %1024 = vmatmul.mubr.bf16.gmra.mxu0 %v2266_v24 }
  0xf9   : > { %1411 = vmatmul.mubr.bf16.gmra.mxu1 %v2266_v24  ;;  %1031 = vmatprep.mubr.bf16.mxu0 %v2267_v25 }
  0xfa   : > { %1418 = vmatprep.mubr.bf16.mxu1 %v2267_v25 }
 0x100   : > { %1032 = vmatmul.mubr.bf16.gmra.mxu0 %v2269_v26 }
 0x101   : > { %1419 = vmatmul.mubr.bf16.gmra.mxu1 %v2269_v26  ;;  %1039 = vmatprep.mubr.bf16.mxu0 %v2270_v27 }
 0x102   : > { %1426 = vmatprep.mubr.bf16.mxu1 %v2270_v27 }
 0x108   : > { %1040 = vmatmul.mubr.bf16.gmra.mxu0 %v2272_v28 }
 0x109   : > { %1427 = vmatmul.mubr.bf16.gmra.mxu1 %v2272_v28  ;;  %1047 = vmatprep.mubr.bf16.mxu0 %v2273_v29 }
 0x10a   : > { %1434 = vmatprep.mubr.bf16.mxu1 %v2273_v29 }
 0x110   : > { %1048 = vmatmul.mubr.bf16.gmra.mxu0 %v2275_v30 }
 0x111   : > { %1435 = vmatmul.mubr.bf16.gmra.mxu1 %v2275_v30  ;;  %1055 = vmatprep.mubr.bf16.mxu0 %v2276_v31 }
 0x112   : > { %1442 = vmatprep.mubr.bf16.mxu1 %v2276_v31  ;;  %v589_v31 = vld [vmem:[#allocation2 + $0x130] sm:$0xff] }
 0x118   : > { %1056 = vmatmul.mubr.bf16.gmra.mxu0 %v2278_v32 }
 0x119   : > { %1443 = vmatmul.mubr.bf16.gmra.mxu1 %v2278_v32 }
 0x160   : > { %v1902_v33 = vpop.f32.mrf.mxu0 }
 0x161   : > { %v2014_v34 = vpop.f32.mrf.mxu1 }
 0x162   : > { %v1903_v36 = vpop.f32.mrf.mxu0 }
 0x163   : > { %v2015_v38 = vpop.f32.mrf.mxu1  ;;  %v1904_v39 = vadd.f32 %v1903_v36, %v1902_v33  ;;  %v1135_v33 = vld [vmem:[#allocation2 + $0x20] sm:$0xff] }
 0x164   : > { %v2016_v40 = vadd.f32 %v2015_v38, %v2014_v34  ;;  %v1905_v41 = vpop.f32.mrf.mxu0 }
 0x165   : > { %v2017_v42 = vpop.f32.mrf.mxu1  ;;  %v1064_v43 = vadd.f32 %v1904_v39, %v583_v35 }
 0x166   : > { %v1451_v44 = vadd.f32 %v2016_v40, %v1129_v37  ;;  %v1906_v46 = vpop.f32.mrf.mxu0 }
 0x167   : > { %v2018_v48 = vpop.f32.mrf.mxu1  ;;  %1096 = vst [vmem:[#allocation2 + $0xb0] sm:$0xff] %v1064_v43  ;;  %v1907_v49 = vadd.f32 %v1906_v46, %v1905_v41  ;;  %v590_v41 = vld [vmem:[#allocation2 + $0x48] sm:$0xff] }
 0x168   : > { %1483 = vst [vmem:[#allocation2 + $0x148] sm:$0xff] %v1451_v44  ;;  %v2019_v50 = vadd.f32 %v2018_v48, %v2017_v42  ;;  %v1908_v51 = vpop.f32.mrf.mxu0  ;;  %v1136_v43 = vld [vmem:[#allocation2 + $0x128] sm:$0xff] }
 0x169   : > { %v2020_v52 = vpop.f32.mrf.mxu1  ;;  %v1065_v53 = vadd.f32 %v1907_v49, %v584_v45 }
 0x16a   : > { %v1452_v54 = vadd.f32 %v2019_v50, %v1130_v47  ;;  %v1909_v56 = vpop.f32.mrf.mxu0 }
 0x16b   : > { %v2021_v58 = vpop.f32.mrf.mxu1  ;;  %1097 = vst [vmem:[#allocation2 + $0x1b0] sm:$0xff] %v1065_v53  ;;  %v1910_v59 = vadd.f32 %v1909_v56, %v1908_v51  ;;  %v591_v51 = vld [vmem:[#allocation2 + $0x180] sm:$0xff] }
 0x16c   : > { %1484 = vst [vmem:[#allocation2 + $0x1d0] sm:$0xff] %v1452_v54  ;;  %v2022_v60 = vadd.f32 %v2021_v58, %v2020_v52  ;;  %v1911_v61 = vpop.f32.mrf.mxu0  ;;  %v1137_v53 = vld [vmem:[#allocation2 + $0x1a0] sm:$0xff] }
 0x16d   : > { %v2023_v62 = vpop.f32.mrf.mxu1  ;;  %v1066_v63 = vadd.f32 %v1910_v59, %v585_v55 }
 0x16e   : > { %v1453_v0 = vadd.f32 %v2022_v60, %v1131_v57  ;;  %v1912_v2 = vpop.f32.mrf.mxu0 }
 0x16f   : > { %v2024_v4 = vpop.f32.mrf.mxu1  ;;  %1098 = vst [vmem:[#allocation2 + $0xd8] sm:$0xff] %v1066_v63  ;;  %v1913_v5 = vadd.f32 %v1912_v2, %v1911_v61  ;;  %v592_v61 = vld [vmem:[#allocation2 + $0x110] sm:$0xff] }
 0x170   : > { %1485 = vst [vmem:[#allocation2 + $0x100] sm:$0xff] %v1453_v0  ;;  %v2025_v6 = vadd.f32 %v2024_v4, %v2023_v62  ;;  %v1914_v7 = vpop.f32.mrf.mxu0  ;;  %v1138_v63 = vld [vmem:[#allocation2 + $0x1f0] sm:$0xff] }
 0x171   : > { %v2026_v8 = vpop.f32.mrf.mxu1  ;;  %v1067_v9 = vadd.f32 %v1913_v5, %v586_v1 }
 0x172   : > { %v1454_v10 = vadd.f32 %v2025_v6, %v1132_v3  ;;  %v1915_v12 = vpop.f32.mrf.mxu0 }
 0x173   : > { %v2027_v14 = vpop.f32.mrf.mxu1  ;;  %1099 = vst [vmem:[#allocation2 + $0x18] sm:$0xff] %v1067_v9  ;;  %v1916_v15 = vadd.f32 %v1915_v12, %v1914_v7  ;;  %v593_v7 = vld [vmem:[#allocation2 + $0x118] sm:$0xff]  ;;  %v1139_v9 = vld [vmem:[#allocation2 + $0xe8] sm:$0xff] }
 0x174   : > { %1486 = vst [vmem:[#allocation2 + $0xc8] sm:$0xff] %v1454_v10  ;;  %v2028_v16 = vadd.f32 %v2027_v14, %v2026_v8  ;;  %v1917_v17 = vpop.f32.mrf.mxu0 }
 0x175   : > { %v2029_v18 = vpop.f32.mrf.mxu1  ;;  %v1068_v19 = vadd.f32 %v1916_v15, %v587_v11 }
 0x176   : > { %v1455_v20 = vadd.f32 %v2028_v16, %v1133_v13  ;;  %v1918_v22 = vpop.f32.mrf.mxu0 }
 0x177   : > { %v2030_v24 = vpop.f32.mrf.mxu1  ;;  %1100 = vst [vmem:[#allocation2 + $0x50] sm:$0xff] %v1068_v19  ;;  %v1919_v25 = vadd.f32 %v1918_v22, %v1917_v17  ;;  %v594_v17 = vld [vmem:[#allocation2 + $0x98] sm:$0xff] }
 0x178   : > { %1487 = vst [vmem:[#allocation2 + $0x40] sm:$0xff] %v1455_v20  ;;  %v2031_v26 = vadd.f32 %v2030_v24, %v2029_v18  ;;  %v1920_v27 = vpop.f32.mrf.mxu0  ;;  %v1140_v19 = vld [vmem:[#allocation2 + $0x78] sm:$0xff] }
 0x179   : > { %v2032_v28 = vpop.f32.mrf.mxu1  ;;  %v1069_v29 = vadd.f32 %v1919_v25, %v588_v21 }
 0x17a   : > { %v1456_v30 = vadd.f32 %v2031_v26, %v1134_v23  ;;  %v1921_v32 = vpop.f32.mrf.mxu0 }
 0x17b   : > { %v2033_v34 = vpop.f32.mrf.mxu1  ;;  %1101 = vst [vmem:[#allocation2 + $0x168] sm:$0xff] %v1069_v29  ;;  %v1922_v35 = vadd.f32 %v1921_v32, %v1920_v27  ;;  %v595_v27 = vld [vmem:[#allocation2 + $0x120] sm:$0xff]  ;;  %v1141_v29 = vld [vmem:[#allocation2 + $0x70] sm:$0xff] }
 0x17c   : > { %1488 = vst [vmem:[#allocation2 + $0x1f8] sm:$0xff] %v1456_v30  ;;  %v2034_v36 = vadd.f32 %v2033_v34, %v2032_v28  ;;  %v1923_v37 = vpop.f32.mrf.mxu0 }
 0x17d   : > { %v2035_v38 = vpop.f32.mrf.mxu1  ;;  %v1070_v39 = vadd.f32 %v1922_v35, %v589_v31 }
 0x17e   : > { %v1457_v40 = vadd.f32 %v2034_v36, %v1135_v33  ;;  %v1924_v42 = vpop.f32.mrf.mxu0 }
 0x17f   : > { %v2036_v44 = vpop.f32.mrf.mxu1  ;;  %1102 = vst [vmem:[#allocation2 + $0x130] sm:$0xff] %v1070_v39  ;;  %v1925_v45 = vadd.f32 %v1924_v42, %v1923_v37  ;;  %v596_v37 = vld [vmem:[#allocation2 + $0x150] sm:$0xff] }
 0x180   : > { %1489 = vst [vmem:[#allocation2 + $0x20] sm:$0xff] %v1457_v40  ;;  %v2037_v46 = vadd.f32 %v2036_v44, %v2035_v38  ;;  %v1926_v47 = vpop.f32.mrf.mxu0  ;;  %v1142_v39 = vld [vmem:[#allocation2 + $0x90] sm:$0xff] }
 0x181   : > { %v2038_v48 = vpop.f32.mrf.mxu1  ;;  %v1071_v49 = vadd.f32 %v1925_v45, %v590_v41 }
 0x182   : > { %v1458_v50 = vadd.f32 %v2037_v46, %v1136_v43  ;;  %v1927_v52 = vpop.f32.mrf.mxu0 }
 0x183   : > { %v2039_v54 = vpop.f32.mrf.mxu1  ;;  %1103 = vst [vmem:[#allocation2 + $0x48] sm:$0xff] %v1071_v49  ;;  %v1928_v55 = vadd.f32 %v1927_v52, %v1926_v47  ;;  %v597_v47 = vld [vmem:[#allocation2 + $0x108] sm:$0xff]  ;;  %v1143_v49 = vld [vmem:[#allocation2 + $0x1d8] sm:$0xff] }
 0x184   : > { %1490 = vst [vmem:[#allocation2 + $0x128] sm:$0xff] %v1458_v50  ;;  %v2040_v56 = vadd.f32 %v2039_v54, %v2038_v48  ;;  %v1929_v57 = vpop.f32.mrf.mxu0 }
 0x185   : > { %v2041_v58 = vpop.f32.mrf.mxu1  ;;  %v1072_v59 = vadd.f32 %v1928_v55, %v591_v51 }
 0x186   : > { %v1459_v60 = vadd.f32 %v2040_v56, %v1137_v53  ;;  %v1930_v62 = vpop.f32.mrf.mxu0 }
 0x187   : > { %v2042_v0 = vpop.f32.mrf.mxu1  ;;  %1104 = vst [vmem:[#allocation2 + $0x180] sm:$0xff] %v1072_v59  ;;  %v1931_v1 = vadd.f32 %v1930_v62, %v1929_v57  ;;  %v598_v57 = vld [vmem:[#allocation2 + $0x60] sm:$0xff]  ;;  %v1144_v59 = vld [vmem:[#allocation2 + $0xd0] sm:$0xff] }
 0x188   : > { %1491 = vst [vmem:[#allocation2 + $0x1a0] sm:$0xff] %v1459_v60  ;;  %v2043_v2 = vadd.f32 %v2042_v0, %v2041_v58  ;;  %v1932_v3 = vpop.f32.mrf.mxu0 }
 0x189   : > { %v2044_v4 = vpop.f32.mrf.mxu1  ;;  %v1073_v5 = vadd.f32 %v1931_v1, %v592_v61 }
 0x18a   : > { %v1460_v6 = vadd.f32 %v2043_v2, %v1138_v63  ;;  %v1933_v8 = vpop.f32.mrf.mxu0 }
 0x18b   : > { %v2045_v10 = vpop.f32.mrf.mxu1  ;;  %1105 = vst [vmem:[#allocation2 + $0x110] sm:$0xff] %v1073_v5  ;;  %v1934_v11 = vadd.f32 %v1933_v8, %v1932_v3  ;;  %v599_v3 = vld [vmem:[#allocation2 + $0xe0] sm:$0xff]  ;;  %v1145_v5 = vld [vmem:[#allocation2 + $0xb8] sm:$0xff] }
 0x18c   : > { %1492 = vst [vmem:[#allocation2 + $0x1f0] sm:$0xff] %v1460_v6  ;;  %v2046_v12 = vadd.f32 %v2045_v10, %v2044_v4  ;;  %v1935_v13 = vpop.f32.mrf.mxu0 }
 0x18d   : > { %v2047_v14 = vpop.f32.mrf.mxu1  ;;  %v1074_v15 = vadd.f32 %v1934_v11, %v593_v7 }
 0x18e   : > { %v1461_v16 = vadd.f32 %v2046_v12, %v1139_v9  ;;  %v1936_v18 = vpop.f32.mrf.mxu0 }
 0x18f   : > { %v2048_v20 = vpop.f32.mrf.mxu1  ;;  %1106 = vst [vmem:[#allocation2 + $0x118] sm:$0xff] %v1074_v15  ;;  %v1937_v21 = vadd.f32 %v1936_v18, %v1935_v13  ;;  %v600_v13 = vld [vmem:[#allocation2 + $0x188] sm:$0xff] }
 0x190   : > { %1493 = vst [vmem:[#allocation2 + $0xe8] sm:$0xff] %v1461_v16  ;;  %v2049_v22 = vadd.f32 %v2048_v20, %v2047_v14  ;;  %v1938_v23 = vpop.f32.mrf.mxu0  ;;  %v1146_v15 = vld [vmem:[#allocation2 + $0x88] sm:$0xff] }
 0x191   : > { %v2050_v24 = vpop.f32.mrf.mxu1  ;;  %v1075_v25 = vadd.f32 %v1937_v21, %v594_v17 }
 0x192   : > { %v1462_v26 = vadd.f32 %v2049_v22, %v1140_v19  ;;  %v1939_v28 = vpop.f32.mrf.mxu0 }
 0x193   : > { %v2051_v30 = vpop.f32.mrf.mxu1  ;;  %1107 = vst [vmem:[#allocation2 + $0x98] sm:$0xff] %v1075_v25  ;;  %v1940_v31 = vadd.f32 %v1939_v28, %v1938_v23  ;;  %v601_v23 = vld [vmem:[#allocation2 + $0x138] sm:$0xff]  ;;  %v1147_v25 = vld [vmem:[#allocation2 + $0xa8] sm:$0xff] }
 0x194   : > { %1494 = vst [vmem:[#allocation2 + $0x78] sm:$0xff] %v1462_v26  ;;  %v2052_v32 = vadd.f32 %v2051_v30, %v2050_v24  ;;  %v1941_v33 = vpop.f32.mrf.mxu0 }
 0x195   : > { %v2053_v34 = vpop.f32.mrf.mxu1  ;;  %v1076_v35 = vadd.f32 %v1940_v31, %v595_v27 }
 0x196   : > { %v1463_v36 = vadd.f32 %v2052_v32, %v1141_v29  ;;  %v1942_v38 = vpop.f32.mrf.mxu0 }
 0x197   : > { %v2054_v40 = vpop.f32.mrf.mxu1  ;;  %1108 = vst [vmem:[#allocation2 + $0x120] sm:$0xff] %v1076_v35  ;;  %v1943_v41 = vadd.f32 %v1942_v38, %v1941_v33  ;;  %v602_v33 = vld [vmem:[#allocation2 + $0x140] sm:$0xff]  ;;  %v1148_v35 = vld [vmem:[#allocation2 + $0x1c8] sm:$0xff] }
 0x198   : > { %1495 = vst [vmem:[#allocation2 + $0x70] sm:$0xff] %v1463_v36  ;;  %v2055_v42 = vadd.f32 %v2054_v40, %v2053_v34  ;;  %v1944_v43 = vpop.f32.mrf.mxu0 }
 0x199   : > { %v2056_v44 = vpop.f32.mrf.mxu1  ;;  %v1077_v45 = vadd.f32 %v1943_v41, %v596_v37 }
 0x19a   : > { %v1464_v46 = vadd.f32 %v2055_v42, %v1142_v39  ;;  %v1945_v48 = vpop.f32.mrf.mxu0 }
 0x19b   : > { %v2057_v50 = vpop.f32.mrf.mxu1  ;;  %1109 = vst [vmem:[#allocation2 + $0x150] sm:$0xff] %v1077_v45  ;;  %v1946_v51 = vadd.f32 %v1945_v48, %v1944_v43  ;;  %v603_v43 = vld [vmem:[#allocation2 + $0x80] sm:$0xff]  ;;  %v1149_v45 = vld [vmem:[#allocation2 + $0x170] sm:$0xff] }
 0x19c   : > { %1496 = vst [vmem:[#allocation2 + $0x90] sm:$0xff] %v1464_v46  ;;  %v2058_v52 = vadd.f32 %v2057_v50, %v2056_v44  ;;  %v1947_v53 = vpop.f32.mrf.mxu0 }
 0x19d   : > { %v2059_v54 = vpop.f32.mrf.mxu1  ;;  %v1078_v55 = vadd.f32 %v1946_v51, %v597_v47 }
 0x19e   : > { %v1465_v56 = vadd.f32 %v2058_v52, %v1143_v49  ;;  %v1948_v58 = vpop.f32.mrf.mxu0 }
 0x19f   : > { %v2060_v60 = vpop.f32.mrf.mxu1  ;;  %1110 = vst [vmem:[#allocation2 + $0x108] sm:$0xff] %v1078_v55  ;;  %v1949_v61 = vadd.f32 %v1948_v58, %v1947_v53  ;;  %v604_v53 = vld [vmem:[#allocation2 + $0x1a8] sm:$0xff]  ;;  %v1150_v55 = vld [vmem:[#allocation2 + $0x178] sm:$0xff] }
 0x1a0   : > { %1497 = vst [vmem:[#allocation2 + $0x1d8] sm:$0xff] %v1465_v56  ;;  %v2061_v62 = vadd.f32 %v2060_v60, %v2059_v54  ;;  %v1950_v63 = vpop.f32.mrf.mxu0 }
 0x1a1   : > { %v2062_v0 = vpop.f32.mrf.mxu1  ;;  %v1079_v1 = vadd.f32 %v1949_v61, %v598_v57 }
 0x1a2   : > { %v1466_v2 = vadd.f32 %v2061_v62, %v1144_v59  ;;  %v1951_v4 = vpop.f32.mrf.mxu0 }
 0x1a3   : > { %v2063_v6 = vpop.f32.mrf.mxu1  ;;  %1111 = vst [vmem:[#allocation2 + $0x60] sm:$0xff] %v1079_v1  ;;  %v1952_v7 = vadd.f32 %v1951_v4, %v1950_v63  ;;  %v605_v63 = vld [vmem:[#allocation2 + $0x1b8] sm:$0xff]  ;;  %v1151_v1 = vld [vmem:[#allocation2 + $0x68] sm:$0xff] }
 0x1a4   : > { %1498 = vst [vmem:[#allocation2 + $0xd0] sm:$0xff] %v1466_v2  ;;  %v2064_v8 = vadd.f32 %v2063_v6, %v2062_v0  ;;  %v1953_v9 = vpop.f32.mrf.mxu0 }
 0x1a5   : > { %v2065_v10 = vpop.f32.mrf.mxu1  ;;  %v1080_v11 = vadd.f32 %v1952_v7, %v599_v3 }
 0x1a6   : > { %v1467_v12 = vadd.f32 %v2064_v8, %v1145_v5  ;;  %v1954_v14 = vpop.f32.mrf.mxu0 }
 0x1a7   : > { %v2066_v16 = vpop.f32.mrf.mxu1  ;;  %1112 = vst [vmem:[#allocation2 + $0xe0] sm:$0xff] %v1080_v11  ;;  %v1955_v17 = vadd.f32 %v1954_v14, %v1953_v9  ;;  %v606_v9 = vld [vmem:[#allocation2 + $0x28] sm:$0xff]  ;;  %v1152_v11 = vld [vmem:[#allocation2 + $0x190] sm:$0xff] }
 0x1a8   : > { %1499 = vst [vmem:[#allocation2 + $0xb8] sm:$0xff] %v1467_v12  ;;  %v2067_v18 = vadd.f32 %v2066_v16, %v2065_v10  ;;  %v1956_v19 = vpop.f32.mrf.mxu0 }
 0x1a9   : > { %v2068_v20 = vpop.f32.mrf.mxu1  ;;  %v1081_v21 = vadd.f32 %v1955_v17, %v600_v13 }
 0x1aa   : > { %v1468_v22 = vadd.f32 %v2067_v18, %v1146_v15  ;;  %v1957_v24 = vpop.f32.mrf.mxu0 }
 0x1ab   : > { %v2069_v26 = vpop.f32.mrf.mxu1  ;;  %1113 = vst [vmem:[#allocation2 + $0x188] sm:$0xff] %v1081_v21  ;;  %v1958_v27 = vadd.f32 %v1957_v24, %v1956_v19  ;;  %v607_v19 = vld [vmem:[#allocation2 + $0x1e8] sm:$0xff]  ;;  %v1153_v21 = vld [vmem:[#allocation2 + $0x198] sm:$0xff] }
 0x1ac   : > { %1500 = vst [vmem:[#allocation2 + $0x88] sm:$0xff] %v1468_v22  ;;  %v2070_v28 = vadd.f32 %v2069_v26, %v2068_v20  ;;  %v1959_v29 = vpop.f32.mrf.mxu0 }
 0x1ad   : > { %v2071_v30 = vpop.f32.mrf.mxu1  ;;  %v1082_v31 = vadd.f32 %v1958_v27, %v601_v23 }
 0x1ae   : > { %v1469_v32 = vadd.f32 %v2070_v28, %v1147_v25  ;;  %v1960_v34 = vpop.f32.mrf.mxu0 }
 0x1af   : > { %v2072_v36 = vpop.f32.mrf.mxu1  ;;  %1114 = vst [vmem:[#allocation2 + $0x138] sm:$0xff] %v1082_v31  ;;  %v1961_v37 = vadd.f32 %v1960_v34, %v1959_v29  ;;  %v608_v29 = vld [vmem:[#allocation2 + $0xf8] sm:$0xff] }
 0x1b0   : > { %1501 = vst [vmem:[#allocation2 + $0xa8] sm:$0xff] %v1469_v32  ;;  %v2073_v38 = vadd.f32 %v2072_v36, %v2071_v30  ;;  %v1962_v39 = vpop.f32.mrf.mxu0  ;;  %v1154_v31 = vld [vmem:[#allocation2 + $0x38] sm:$0xff] }
 0x1b1   : > { %v2074_v40 = vpop.f32.mrf.mxu1  ;;  %v1083_v41 = vadd.f32 %v1961_v37, %v602_v33 }
 0x1b2   : > { %v1470_v42 = vadd.f32 %v2073_v38, %v1148_v35  ;;  %v1963_v44 = vpop.f32.mrf.mxu0 }
 0x1b3   : > { %v2075_v46 = vpop.f32.mrf.mxu1  ;;  %1115 = vst [vmem:[#allocation2 + $0x140] sm:$0xff] %v1083_v41  ;;  %v1964_v47 = vadd.f32 %v1963_v44, %v1962_v39  ;;  %v609_v39 = vld [vmem:[#allocation2 + $0x160] sm:$0xff] }
 0x1b4   : > { %1502 = vst [vmem:[#allocation2 + $0x1c8] sm:$0xff] %v1470_v42  ;;  %v2076_v48 = vadd.f32 %v2075_v46, %v2074_v40  ;;  %v1965_v49 = vpop.f32.mrf.mxu0  ;;  %v1155_v41 = vld [vmem:[#allocation2 + $0xc0] sm:$0xff] }
 0x1b5   : > { %v2077_v50 = vpop.f32.mrf.mxu1  ;;  %v1084_v51 = vadd.f32 %v1964_v47, %v603_v43 }
 0x1b6   : > { %v1471_v52 = vadd.f32 %v2076_v48, %v1149_v45  ;;  %v1966_v54 = vpop.f32.mrf.mxu0 }
 0x1b7   : > { %v2078_v56 = vpop.f32.mrf.mxu1  ;;  %1116 = vst [vmem:[#allocation2 + $0x80] sm:$0xff] %v1084_v51  ;;  %v1967_v57 = vadd.f32 %v1966_v54, %v1965_v49  ;;  %v610_v49 = vld [vmem:[#allocation2 + $0x30] sm:$0xff]  ;;  %v1156_v51 = vld [vmem:[#allocation2 + $0x1c0] sm:$0xff] }
 0x1b8   : > { %1503 = vst [vmem:[#allocation2 + $0x170] sm:$0xff] %v1471_v52  ;;  %v2079_v58 = vadd.f32 %v2078_v56, %v2077_v50  ;;  %v1968_v59 = vpop.f32.mrf.mxu0 }
 0x1b9   : > { %v2080_v60 = vpop.f32.mrf.mxu1  ;;  %v1085_v61 = vadd.f32 %v1967_v57, %v604_v53 }
 0x1ba   : > { %v1472_v62 = vadd.f32 %v2079_v58, %v1150_v55  ;;  %v1969_v0 = vpop.f32.mrf.mxu0 }
 0x1bb   : > { %v2081_v2 = vpop.f32.mrf.mxu1  ;;  %1117 = vst [vmem:[#allocation2 + $0x1a8] sm:$0xff] %v1085_v61  ;;  %v1970_v3 = vadd.f32 %v1969_v0, %v1968_v59  ;;  %v611_v59 = vld [vmem:[#allocation2 + $0x1e0] sm:$0xff]  ;;  %v1157_v61 = vld [vmem:[#allocation2 + $0x158] sm:$0xff] }
 0x1bc   : > { %1504 = vst [vmem:[#allocation2 + $0x178] sm:$0xff] %v1472_v62  ;;  %v2082_v4 = vadd.f32 %v2081_v2, %v2080_v60  ;;  %v1971_v5 = vpop.f32.mrf.mxu0 }
 0x1bd   : > { %v2083_v6 = vpop.f32.mrf.mxu1  ;;  %v1086_v7 = vadd.f32 %v1970_v3, %v605_v63 }
 0x1be   : > { %v1473_v8 = vadd.f32 %v2082_v4, %v1151_v1  ;;  %v1972_v10 = vpop.f32.mrf.mxu0 }
 0x1bf   : > { %v2084_v12 = vpop.f32.mrf.mxu1  ;;  %1118 = vst [vmem:[#allocation2 + $0x1b8] sm:$0xff] %v1086_v7  ;;  %v1973_v13 = vadd.f32 %v1972_v10, %v1971_v5  ;;  %v612_v5 = vld [vmem:[#allocation2] sm:$0xff]  ;;  %v1158_v7 = vld [vmem:[#allocation2 + $0x10] sm:$0xff] }
 0x1c0   : > { %1505 = vst [vmem:[#allocation2 + $0x68] sm:$0xff] %v1473_v8  ;;  %v2085_v14 = vadd.f32 %v2084_v12, %v2083_v6  ;;  %v1974_v15 = vpop.f32.mrf.mxu0 }
 0x1c1   : > { %v2086_v16 = vpop.f32.mrf.mxu1  ;;  %v1087_v17 = vadd.f32 %v1973_v13, %v606_v9 }
 0x1c2   : > { %v1474_v18 = vadd.f32 %v2085_v14, %v1152_v11  ;;  %v1975_v20 = vpop.f32.mrf.mxu0 }
 0x1c3   : > { %v2087_v22 = vpop.f32.mrf.mxu1  ;;  %1119 = vst [vmem:[#allocation2 + $0x28] sm:$0xff] %v1087_v17  ;;  %v1976_v23 = vadd.f32 %v1975_v20, %v1974_v15  ;;  %v613_v15 = vld [vmem:[#allocation2 + $0xf0] sm:$0xff]  ;;  %v1159_v17 = vld [vmem:[#allocation2 + $0x58] sm:$0xff] }
 0x1c4   : > { %1506 = vst [vmem:[#allocation2 + $0x190] sm:$0xff] %v1474_v18  ;;  %v2088_v24 = vadd.f32 %v2087_v22, %v2086_v16  ;;  %v1977_v25 = vpop.f32.mrf.mxu0 }
 0x1c5   : > { %v2089_v26 = vpop.f32.mrf.mxu1  ;;  %v1088_v27 = vadd.f32 %v1976_v23, %v607_v19 }
 0x1c6   : > { %v1475_v28 = vadd.f32 %v2088_v24, %v1153_v21  ;;  %v1978_v30 = vpop.f32.mrf.mxu0 }
 0x1c7   : > { %v2090_v32 = vpop.f32.mrf.mxu1  ;;  %1120 = vst [vmem:[#allocation2 + $0x1e8] sm:$0xff] %v1088_v27  ;;  %v1979_v33 = vadd.f32 %v1978_v30, %v1977_v25  ;;  %v614_v25 = vld [vmem:[#allocation2 + $0x8] sm:$0xff]  ;;  %v1160_v27 = vld [vmem:[#allocation2 + $0xa0] sm:$0xff] }
 0x1c8   : > { %1507 = vst [vmem:[#allocation2 + $0x198] sm:$0xff] %v1475_v28  ;;  %v2091_v34 = vadd.f32 %v2090_v32, %v2089_v26  ;;  %v1980_v35 = vpop.f32.mrf.mxu0 }
 0x1c9   : > { %v2092_v36 = vpop.f32.mrf.mxu1  ;;  %v1089_v37 = vadd.f32 %v1979_v33, %v608_v29 }
 0x1ca   : > { %v1476_v38 = vadd.f32 %v2091_v34, %v1154_v31  ;;  %v1981_v40 = vpop.f32.mrf.mxu0 }
 0x1cb   : > { %v2093_v42 = vpop.f32.mrf.mxu1  ;;  %1121 = vst [vmem:[#allocation2 + $0xf8] sm:$0xff] %v1089_v37  ;;  %v1982_v43 = vadd.f32 %v1981_v40, %v1980_v35 }
 0x1cc   : > { %1508 = vst [vmem:[#allocation2 + $0x38] sm:$0xff] %v1476_v38  ;;  %v2094_v44 = vadd.f32 %v2093_v42, %v2092_v36  ;;  %v1983_v45 = vpop.f32.mrf.mxu0 }
 0x1cd   : > { %v2095_v46 = vpop.f32.mrf.mxu1  ;;  %v1090_v47 = vadd.f32 %v1982_v43, %v609_v39 }
 0x1ce   : > { %v1477_v48 = vadd.f32 %v2094_v44, %v1155_v41  ;;  %v1984_v50 = vpop.f32.mrf.mxu0 }
 0x1cf   : > { %v2096_v52 = vpop.f32.mrf.mxu1  ;;  %1122 = vst [vmem:[#allocation2 + $0x160] sm:$0xff] %v1090_v47  ;;  %v1985_v53 = vadd.f32 %v1984_v50, %v1983_v45 }
 0x1d0   : > { %1509 = vst [vmem:[#allocation2 + $0xc0] sm:$0xff] %v1477_v48  ;;  %v2097_v54 = vadd.f32 %v2096_v52, %v2095_v46  ;;  %v1986_v55 = vpop.f32.mrf.mxu0 }
 0x1d1   : > { %v2098_v56 = vpop.f32.mrf.mxu1  ;;  %v1091_v57 = vadd.f32 %v1985_v53, %v610_v49 }
 0x1d2   : > { %v1478_v58 = vadd.f32 %v2097_v54, %v1156_v51  ;;  %v1987_v60 = vpop.f32.mrf.mxu0 }
 0x1d3   : > { %v2099_v62 = vpop.f32.mrf.mxu1  ;;  %1123 = vst [vmem:[#allocation2 + $0x30] sm:$0xff] %v1091_v57  ;;  %v1988_v63 = vadd.f32 %v1987_v60, %v1986_v55 }
 0x1d4   : > { %1510 = vst [vmem:[#allocation2 + $0x1c0] sm:$0xff] %v1478_v58  ;;  %v2100_v0 = vadd.f32 %v2099_v62, %v2098_v56  ;;  %v1989_v1 = vpop.f32.mrf.mxu0 }
 0x1d5   : > { %v2101_v2 = vpop.f32.mrf.mxu1  ;;  %v1092_v3 = vadd.f32 %v1988_v63, %v611_v59 }
 0x1d6   : > { %v1479_v4 = vadd.f32 %v2100_v0, %v1157_v61  ;;  %v1990_v6 = vpop.f32.mrf.mxu0 }
 0x1d7   : > { %v2102_v8 = vpop.f32.mrf.mxu1  ;;  %1124 = vst [vmem:[#allocation2 + $0x1e0] sm:$0xff] %v1092_v3  ;;  %v1991_v9 = vadd.f32 %v1990_v6, %v1989_v1 }
 0x1d8   : > { %1511 = vst [vmem:[#allocation2 + $0x158] sm:$0xff] %v1479_v4  ;;  %v2103_v10 = vadd.f32 %v2102_v8, %v2101_v2  ;;  %v1992_v11 = vpop.f32.mrf.mxu0 }
 0x1d9   : > { %v2104_v12 = vpop.f32.mrf.mxu1  ;;  %v1093_v13 = vadd.f32 %v1991_v9, %v612_v5 }
 0x1da   : > { %v1480_v14 = vadd.f32 %v2103_v10, %v1158_v7  ;;  %v1993_v16 = vpop.f32.mrf.mxu0 }
 0x1db   : > { %v2105_v18 = vpop.f32.mrf.mxu1  ;;  %1125 = vst [vmem:[#allocation2] sm:$0xff] %v1093_v13  ;;  %v1994_v19 = vadd.f32 %v1993_v16, %v1992_v11 }
 0x1dc   : > { %1512 = vst [vmem:[#allocation2 + $0x10] sm:$0xff] %v1480_v14  ;;  %v2106_v20 = vadd.f32 %v2105_v18, %v2104_v12  ;;  %v1995_v21 = vpop.f32.mrf.mxu0 }
 0x1dd   : > { %v2107_v22 = vpop.f32.mrf.mxu1  ;;  %v1094_v23 = vadd.f32 %v1994_v19, %v613_v15 }
 0x1de   : > { %v1481_v24 = vadd.f32 %v2106_v20, %v1159_v17  ;;  %v1996_v26 = vpop.f32.mrf.mxu0 }
 0x1df   : > { %v2108_v28 = vpop.f32.mrf.mxu1  ;;  %1126 = vst [vmem:[#allocation2 + $0xf0] sm:$0xff] %v1094_v23  ;;  %v1997_v29 = vadd.f32 %v1996_v26, %v1995_v21 }
 0x1e0   : > { %1513 = vst [vmem:[#allocation2 + $0x58] sm:$0xff] %v1481_v24  ;;  %v2109_v30 = vadd.f32 %v2108_v28, %v2107_v22  ;;  %1518 = sbr.rel (%p1877_p13) target bundleno = 518 (0x206), region = 77 }
 0x1e1   : > { %v1095_v31 = vadd.f32 %v1997_v29, %v614_v25 }
 0x1e2   : > { %v1482_v32 = vadd.f32 %v2109_v30, %v1160_v27 }
 0x1e3   : > { %1127 = vst [vmem:[#allocation2 + $0x8] sm:$0xff] %v1095_v31 }
 0x1e4   : > { %1514 = vst [vmem:[#allocation2 + $0xa0] sm:$0xff] %v1482_v32 }
 0x1e5   : > { %v1519_v33 = vld [vmem:[#allocation2 + $0xb0] sm:$0xff]  ;;  %v1521_v35 = vld [vmem:[#allocation2 + $0xd8] sm:$0xff]  ;;  %v1524_v38 = vld [vmem:[#allocation2 + $0x168] sm:$0xff] }
 0x1e6   : > { %v1520_v34 = vld [vmem:[#allocation2 + $0x1b0] sm:$0xff]  ;;  %1583 = vst [vmem:[%s2580_s21] sm:$0xff] %v1519_v33  ;;  %1585 = vst [vmem:[%s2580_s21 + $0x10] sm:$0xff] %v1521_v35  ;;  %v1522_v36 = vld [vmem:[#allocation2 + $0x18] sm:$0xff] }
 0x1e7   : > { %1584 = vst [vmem:[%s2580_s21 + $0x8] sm:$0xff] %v1520_v34  ;;  %v1523_v37 = vld [vmem:[#allocation2 + $0x50] sm:$0xff]  ;;  %1586 = vst [vmem:[%s2580_s21 + $0x18] sm:$0xff] %v1522_v36  ;;  %v1526_v40 = vld [vmem:[#allocation2 + $0x48] sm:$0xff] }
 0x1e8   : > { %1587 = vst [vmem:[%s2580_s21 + $0x20] sm:$0xff] %v1523_v37  ;;  %1588 = vst [vmem:[%s2580_s21 + $0x28] sm:$0xff] %v1524_v38  ;;  %v1525_v39 = vld [vmem:[#allocation2 + $0x130] sm:$0xff]  ;;  %v1527_v41 = vld [vmem:[#allocation2 + $0x180] sm:$0xff] }
 0x1e9   : > { %1589 = vst [vmem:[%s2580_s21 + $0x30] sm:$0xff] %v1525_v39  ;;  %1590 = vst [vmem:[%s2580_s21 + $0x38] sm:$0xff] %v1526_v40  ;;  %v1528_v42 = vld [vmem:[#allocation2 + $0x110] sm:$0xff]  ;;  %v1529_v43 = vld [vmem:[#allocation2 + $0x118] sm:$0xff] }
 0x1ea   : > { %1591 = vst [vmem:[%s2580_s21 + $0x40] sm:$0xff] %v1527_v41  ;;  %v1530_v44 = vld [vmem:[#allocation2 + $0x98] sm:$0xff]  ;;  %1592 = vst [vmem:[%s2580_s21 + $0x48] sm:$0xff] %v1528_v42  ;;  %v1531_v45 = vld [vmem:[#allocation2 + $0x120] sm:$0xff] }
 0x1eb   : > { %1593 = vst [vmem:[%s2580_s21 + $0x50] sm:$0xff] %v1529_v43  ;;  %1594 = vst [vmem:[%s2580_s21 + $0x58] sm:$0xff] %v1530_v44  ;;  %v1532_v46 = vld [vmem:[#allocation2 + $0x150] sm:$0xff]  ;;  %v1533_v47 = vld [vmem:[#allocation2 + $0x108] sm:$0xff] }
 0x1ec   : > { %1595 = vst [vmem:[%s2580_s21 + $0x60] sm:$0xff] %v1531_v45  ;;  %1596 = vst [vmem:[%s2580_s21 + $0x68] sm:$0xff] %v1532_v46  ;;  %v1534_v48 = vld [vmem:[#allocation2 + $0x60] sm:$0xff]  ;;  %v1536_v50 = vld [vmem:[#allocation2 + $0x188] sm:$0xff] }
 0x1ed   : > { %1597 = vst [vmem:[%s2580_s21 + $0x70] sm:$0xff] %v1533_v47  ;;  %v1535_v49 = vld [vmem:[#allocation2 + $0xe0] sm:$0xff]  ;;  %1598 = vst [vmem:[%s2580_s21 + $0x78] sm:$0xff] %v1534_v48  ;;  %v1537_v51 = vld [vmem:[#allocation2 + $0x138] sm:$0xff] }
 0x1ee   : > { %1599 = vst [vmem:[%s2580_s21 + $0x80] sm:$0xff] %v1535_v49  ;;  %1600 = vst [vmem:[%s2580_s21 + $0x88] sm:$0xff] %v1536_v50  ;;  %v1538_v52 = vld [vmem:[#allocation2 + $0x140] sm:$0xff]  ;;  %v1540_v54 = vld [vmem:[#allocation2 + $0x1a8] sm:$0xff] }
 0x1ef   : > { %v1539_v53 = vld [vmem:[#allocation2 + $0x80] sm:$0xff]  ;;  %1601 = vst [vmem:[%s2580_s21 + $0x90] sm:$0xff] %v1537_v51  ;;  %1602 = vst [vmem:[%s2580_s21 + $0x98] sm:$0xff] %v1538_v52  ;;  %v1541_v55 = vld [vmem:[#allocation2 + $0x1b8] sm:$0xff] }
 0x1f0   : > { %1603 = vst [vmem:[%s2580_s21 + $0xa0] sm:$0xff] %v1539_v53  ;;  %v1542_v56 = vld [vmem:[#allocation2 + $0x28] sm:$0xff]  ;;  %1604 = vst [vmem:[%s2580_s21 + $0xa8] sm:$0xff] %v1540_v54  ;;  %v1544_v58 = vld [vmem:[#allocation2 + $0xf8] sm:$0xff] }
 0x1f1   : > { %1605 = vst [vmem:[%s2580_s21 + $0xb0] sm:$0xff] %v1541_v55  ;;  %1606 = vst [vmem:[%s2580_s21 + $0xb8] sm:$0xff] %v1542_v56  ;;  %v1543_v57 = vld [vmem:[#allocation2 + $0x1e8] sm:$0xff]  ;;  %v1545_v59 = vld [vmem:[#allocation2 + $0x160] sm:$0xff] }
 0x1f2   : > { %1607 = vst [vmem:[%s2580_s21 + $0xc0] sm:$0xff] %v1543_v57  ;;  %1608 = vst [vmem:[%s2580_s21 + $0xc8] sm:$0xff] %v1544_v58  ;;  %v1546_v60 = vld [vmem:[#allocation2 + $0x30] sm:$0xff]  ;;  %v1547_v61 = vld [vmem:[#allocation2 + $0x1e0] sm:$0xff] }
 0x1f3   : > { %1609 = vst [vmem:[%s2580_s21 + $0xd0] sm:$0xff] %v1545_v59  ;;  %v1548_v62 = vld [vmem:[#allocation2] sm:$0xff]  ;;  %1610 = vst [vmem:[%s2580_s21 + $0xd8] sm:$0xff] %v1546_v60  ;;  %v1549_v63 = vld [vmem:[#allocation2 + $0xf0] sm:$0xff] }
 0x1f4   : > { %1611 = vst [vmem:[%s2580_s21 + $0xe0] sm:$0xff] %v1547_v61  ;;  %1612 = vst [vmem:[%s2580_s21 + $0xe8] sm:$0xff] %v1548_v62  ;;  %v1550_v0 = vld [vmem:[#allocation2 + $0x8] sm:$0xff]  ;;  %v1552_v2 = vld [vmem:[#allocation2 + $0x1d0] sm:$0xff] }
 0x1f5   : > { %v1551_v1 = vld [vmem:[#allocation2 + $0x148] sm:$0xff]  ;;  %1613 = vst [vmem:[%s2580_s21 + $0xf0] sm:$0xff] %v1549_v63  ;;  %1614 = vst [vmem:[%s2580_s21 + $0xf8] sm:$0xff] %v1550_v0  ;;  %v1553_v3 = vld [vmem:[#allocation2 + $0x100] sm:$0xff] }
 0x1f6   : > { %1615 = vst [vmem:[%s2580_s21 + $0x100] sm:$0xff] %v1551_v1  ;;  %v1554_v4 = vld [vmem:[#allocation2 + $0xc8] sm:$0xff]  ;;  %1616 = vst [vmem:[%s2580_s21 + $0x108] sm:$0xff] %v1552_v2  ;;  %v1555_v5 = vld [vmem:[#allocation2 + $0x40] sm:$0xff] }
 0x1f7   : > { %1617 = vst [vmem:[%s2580_s21 + $0x110] sm:$0xff] %v1553_v3  ;;  %1618 = vst [vmem:[%s2580_s21 + $0x118] sm:$0xff] %v1554_v4  ;;  %v1556_v6 = vld [vmem:[#allocation2 + $0x1f8] sm:$0xff]  ;;  %v1557_v7 = vld [vmem:[#allocation2 + $0x20] sm:$0xff] }
 0x1f8   : > { %1619 = vst [vmem:[%s2580_s21 + $0x120] sm:$0xff] %v1555_v5  ;;  %1620 = vst [vmem:[%s2580_s21 + $0x128] sm:$0xff] %v1556_v6  ;;  %v1558_v8 = vld [vmem:[#allocation2 + $0x128] sm:$0xff]  ;;  %v1559_v9 = vld [vmem:[#allocation2 + $0x1a0] sm:$0xff] }
 0x1f9   : > { %1621 = vst [vmem:[%s2580_s21 + $0x130] sm:$0xff] %v1557_v7  ;;  %v1560_v10 = vld [vmem:[#allocation2 + $0x1f0] sm:$0xff]  ;;  %1622 = vst [vmem:[%s2580_s21 + $0x138] sm:$0xff] %v1558_v8  ;;  %v1561_v11 = vld [vmem:[#allocation2 + $0xe8] sm:$0xff] }
 0x1fa   : > { %1623 = vst [vmem:[%s2580_s21 + $0x140] sm:$0xff] %v1559_v9  ;;  %1624 = vst [vmem:[%s2580_s21 + $0x148] sm:$0xff] %v1560_v10  ;;  %v1562_v12 = vld [vmem:[#allocation2 + $0x78] sm:$0xff]  ;;  %v1563_v13 = vld [vmem:[#allocation2 + $0x70] sm:$0xff] }
 0x1fb   : > { %1625 = vst [vmem:[%s2580_s21 + $0x150] sm:$0xff] %v1561_v11  ;;  %1626 = vst [vmem:[%s2580_s21 + $0x158] sm:$0xff] %v1562_v12  ;;  %v1564_v14 = vld [vmem:[#allocation2 + $0x90] sm:$0xff]  ;;  %v1565_v15 = vld [vmem:[#allocation2 + $0x1d8] sm:$0xff] }
 0x1fc   : > { %1627 = vst [vmem:[%s2580_s21 + $0x160] sm:$0xff] %v1563_v13  ;;  %v1566_v16 = vld [vmem:[#allocation2 + $0xd0] sm:$0xff]  ;;  %1628 = vst [vmem:[%s2580_s21 + $0x168] sm:$0xff] %v1564_v14  ;;  %v1567_v17 = vld [vmem:[#allocation2 + $0xb8] sm:$0xff] }
 0x1fd   : > { %1629 = vst [vmem:[%s2580_s21 + $0x170] sm:$0xff] %v1565_v15  ;;  %1630 = vst [vmem:[%s2580_s21 + $0x178] sm:$0xff] %v1566_v16  ;;  %v1568_v18 = vld [vmem:[#allocation2 + $0x88] sm:$0xff]  ;;  %v1571_v21 = vld [vmem:[#allocation2 + $0x170] sm:$0xff] }
 0x1fe   : > { %v1569_v19 = vld [vmem:[#allocation2 + $0xa8] sm:$0xff]  ;;  %1631 = vst [vmem:[%s2580_s21 + $0x180] sm:$0xff] %v1567_v17  ;;  %1632 = vst [vmem:[%s2580_s21 + $0x188] sm:$0xff] %v1568_v18  ;;  %v1572_v22 = vld [vmem:[#allocation2 + $0x178] sm:$0xff] }
 0x1ff   : > { %1633 = vst [vmem:[%s2580_s21 + $0x190] sm:$0xff] %v1569_v19  ;;  %v1570_v20 = vld [vmem:[#allocation2 + $0x1c8] sm:$0xff]  ;;  %1635 = vst [vmem:[%s2580_s21 + $0x1a0] sm:$0xff] %v1571_v21  ;;  %v1574_v24 = vld [vmem:[#allocation2 + $0x190] sm:$0xff] }
 0x200   : > { %1634 = vst [vmem:[%s2580_s21 + $0x198] sm:$0xff] %v1570_v20  ;;  %1636 = vst [vmem:[%s2580_s21 + $0x1a8] sm:$0xff] %v1572_v22  ;;  %v1573_v23 = vld [vmem:[#allocation2 + $0x68] sm:$0xff]  ;;  %v1575_v25 = vld [vmem:[#allocation2 + $0x198] sm:$0xff] }
 0x201   : > { %1637 = vst [vmem:[%s2580_s21 + $0x1b0] sm:$0xff] %v1573_v23  ;;  %1638 = vst [vmem:[%s2580_s21 + $0x1b8] sm:$0xff] %v1574_v24  ;;  %v1576_v26 = vld [vmem:[#allocation2 + $0x38] sm:$0xff]  ;;  %v1577_v27 = vld [vmem:[#allocation2 + $0xc0] sm:$0xff] }
 0x202   : > { %1639 = vst [vmem:[%s2580_s21 + $0x1c0] sm:$0xff] %v1575_v25  ;;  %v1578_v28 = vld [vmem:[#allocation2 + $0x1c0] sm:$0xff]  ;;  %1640 = vst [vmem:[%s2580_s21 + $0x1c8] sm:$0xff] %v1576_v26  ;;  %v1579_v29 = vld [vmem:[#allocation2 + $0x158] sm:$0xff] }
 0x203   : > { %1641 = vst [vmem:[%s2580_s21 + $0x1d0] sm:$0xff] %v1577_v27  ;;  %1642 = vst [vmem:[%s2580_s21 + $0x1d8] sm:$0xff] %v1578_v28  ;;  %v1580_v30 = vld [vmem:[#allocation2 + $0x10] sm:$0xff]  ;;  %v1581_v31 = vld [vmem:[#allocation2 + $0x58] sm:$0xff] }
 0x204   : > { %1643 = vst [vmem:[%s2580_s21 + $0x1e0] sm:$0xff] %v1579_v29  ;;  %1644 = vst [vmem:[%s2580_s21 + $0x1e8] sm:$0xff] %v1580_v30  ;;  %v1582_v32 = vld [vmem:[#allocation2 + $0xa0] sm:$0xff] }
 0x205   : > { %1645 = vst [vmem:[%s2580_s21 + $0x1f0] sm:$0xff] %v1581_v31  ;;  %1646 = vst [vmem:[%s2580_s21 + $0x1f8] sm:$0xff] %v1582_v32 }
 0x206 PF: > { %s1648_s7 = scalar_lea.sflag [#allocation8], %s469_s11 }
 0x207   : > { %s2110_s9 = scalar_select %p2474_p4, [#allocation4], [#allocation11] }
 0x208   : > { %s2855_s28 = smov (!%p2474_p4, %s2363_s28), 0  ;;  %s1673_s8 = sshll.u32 %s2580_s21, 4  ;;  %s1674_s8 = int_to_ptr.vmem [resolvable:$true] %s1673_s8 }
 0x209   : > { %s1655_s10 = sld [smem:[%s2110_s9 + %s2855_s28]]  ;;  %s2376_s12 = smov 4096  }
 0x20a   : > { %2112 = sst [smem:[#allocation10]] (%p2474_p4), %s2376_s12  ;;  %s2377_s11 = smov 8192  }
 0x20b   : > { %2113 = sst [smem:[#allocation10 + $0x1]] (%p2474_p4), %s2377_s11  ;;  %s2378_s14 = smov 32  }
 0x20c   : > { %2114 = sst [smem:[#allocation10 + $0x2]] (%p2474_p4), %s2378_s14  ;;  %s2379_s16 = smov 128  }
 0x20d   : > { %2115 = sst [smem:[#allocation10 + $0x3]] (%p2474_p4), %s2379_s16  ;;  %s2380_s18 = smov 8  }
 0x20e   : > { %2116 = sst [smem:[#allocation10 + $0x4]] (%p2474_p4), %s2379_s16  ;;  %s2381_s22 = smov 131072  }
 0x20f   : > { %s1885_s17 = sshll.u32 %s1655_s10, 12  ;;  %2117 = sst [smem:[#allocation10 + $0x5]] (%p2474_p4), %s2380_s18 }
 0x210   : > { %s1662_s26 = scalar_lea.hbm %s2840_s4, %s1885_s17  ;;  %s2382_s23 = smov 0  }
 0x211   : > { %2118 = dma.general (%p2474_p4), %s1674_s8, 8192, %s1662_s26, %s1648_s7, %s2381_s22, [#allocation10], %s2382_s23, 0  }
 0x212 PF: > { %p2124_p0 = scmp.ge.s32.totalorder %s2371_s30, 2  ;;  %s1701_s0 = sand.u32 1, %s2343_s1  }
 0x213   : > { %s1702_s5 = scalar_lea.sflag [#allocation8], %s1701_s0 }
 0x214   : > { %p2121_p1 = pnand %p2124_p0, %p2479_p5 }
 0x216   : > { %p2122_p2 = pneg %p2121_p1 }
 0x218   : > { %2338 = dma.done.wait (%p2122_p2), %s1702_s5, 8192  }
 0x219   : > { %2340 = vsyncadd (%p2122_p2), %s1702_s5, 4294959104  ;;  %s27_s30 = sadd.s32 1, %s2371_s30   ;;  %s2845_s1 = smov %s2347_s24 }
 0x21a   : > { %p24_p3 = scmp.ge.s32.totalorder %s27_s30, 5   ;;  %s2846_s24 = smov %s2351_s25 }
 0x21b   : > { %s2847_s25 = smov %s2488_s20  ;;  %s2848_s26 = smov %s2359_s27 }
 0x21c   : > { %s2849_s27 = smov %s2485_s19  ;;  %s2850_s28 = smov %s2367_s29 }
 0x21d   : > { %s2851_s29 = smov %s2853_s6  ;;  %26 = sbr.rel (!%p24_p3) target bundleno = 30 (0x1e), region = 125 }
 0x222   :  { %1707 = vsyncpa [#allocation8], 1 }
 0x223   :  { %1709 = vsyncpa [#allocation8 + $0x1], 1 }

</bundles_post_ra>
